<compile_context>
chip_gen: v7x
topology: tpu7x:2x2x1
jax: 0.10.0
libtpu: 0.0.40
codegen_flags: <defaults>
</compile_context>

<pallas_src>
import functools

import jax
import jax.numpy as jnp
from jax.experimental import pallas as pl
from jax.experimental.pallas import tpu as pltpu


DIMS = [784, 512, 256, 128, 64, 10]
K_PAD = 896      # layer-1 input (784) padded up to a multiple of 128
PAD_HID = 128    # layer-4 output / layer-5 input padded width
PAD_OUT = 128    # layer-5 (logits) padded lane width
MAX_TILE_B = 1024


def _round_up(x, m):
    return (x + m - 1) // m * m


def _choose_tile(batch, max_tile=MAX_TILE_B, min_steps=2):
    """Tile size: <= max_tile, last-tile waste bounded, >=2 grid steps when
    the batch is big enough (keeps both v7x TCs busy)."""
    steps = max(pl.cdiv(batch, max_tile), min(min_steps, pl.cdiv(batch, 8)))
    return _round_up(pl.cdiv(batch, steps), 8)


def _mlp_kernel(x_ref,
                w1_ref, b1_ref,
                w2_ref, b2_ref,
                w3_ref, b3_ref,
                w4_ref, b4_ref,
                w5_ref, b5_ref,
                o_ref):
    """One batch tile through the whole MLP. x / weights bf16, acc in f32."""
    # Layer 1: x is already bf16 (no in-kernel cast needed).
    h = jnp.dot(x_ref[...], w1_ref[...],
                preferred_element_type=jnp.float32) + b1_ref[...]
    h = jnp.maximum(h, 0.0)

    h = jnp.dot(h.astype(jnp.bfloat16), w2_ref[...],
                preferred_element_type=jnp.float32) + b2_ref[...]
    h = jnp.maximum(h, 0.0)

    h = jnp.dot(h.astype(jnp.bfloat16), w3_ref[...],
                preferred_element_type=jnp.float32) + b3_ref[...]
    h = jnp.maximum(h, 0.0)

    h = jnp.dot(h.astype(jnp.bfloat16), w4_ref[...],
                preferred_element_type=jnp.float32) + b4_ref[...]
    h = jnp.maximum(h, 0.0)                       # (TILE_B, 128); cols 64: are exactly 0

    out = jnp.dot(h.astype(jnp.bfloat16), w5_ref[...],
                  preferred_element_type=jnp.float32) + b5_ref[...]
    o_ref[...] = out.astype(o_ref.dtype)          # lane-dense bf16 (TILE_B, 128) store


def pack_params(params):
    """One-time packing (call OUTSIDE the per-step forward path):
    cast weights to bf16, zero-pad W1's K dim to 896 and the narrow layers to
    128 lanes; biases stay f32 as (1, n) rows (pad entries are 0)."""
    packed = []
    for i, (W, b) in enumerate(params):
        fan_in, fan_out = W.shape
        in_pad = K_PAD if i == 0 else (PAD_HID if i == 4 else fan_in)
        out_pad = PAD_HID if i == 3 else (PAD_OUT if i == 4 else fan_out)
        Wp = jnp.zeros((in_pad, out_pad), jnp.float32).at[:fan_in, :fan_out].set(W)
        bp = jnp.zeros((1, out_pad), jnp.float32).at[0, :fan_out].set(b)
        packed.append((Wp.astype(jnp.bfloat16), bp))
    return packed


@functools.partial(jax.jit, static_argnames=("max_tile_b",))
def mlp_forward(x, packed_params, *, max_tile_b=MAX_TILE_B):
    """x: (B, 1, 28, 28) or (B, 784), any float dtype.
    packed_params: output of pack_params(). Returns (B, 10) bf16 logits."""
    x2d = x.reshape(-1, 784)
    B = x2d.shape[0]

    tile_b = _choose_tile(B, max_tile_b)
    grid_b = pl.cdiv(B, tile_b)
    B_pad = grid_b * tile_b

    # Single fused pass: cast to bf16 + pad K 784->896 + pad batch to B_pad.
    # (Feed bf16 x from the producer to avoid even this cast in production.)
    xp = jnp.pad(x2d.astype(jnp.bfloat16),
                 ((0, B_pad - B), (0, K_PAD - 784)))

    flat_args = [xp]
    in_specs = [pl.BlockSpec((tile_b, K_PAD), lambda i: (i, 0))]
    for W, b in packed_params:
        flat_args += [W, b]
        # Constant block index -> loaded once, resident in VMEM across the grid.
        in_specs += [pl.BlockSpec(W.shape, lambda i: (0, 0)),
                     pl.BlockSpec(b.shape, lambda i: (0, 0))]

    weight_bytes = sum(W.size * W.dtype.itemsize + b.size * b.dtype.itemsize
                       for W, b in packed_params)
    flops = 2 * B_pad * (K_PAD * 512 + 512 * 256 + 256 * 128
                         + 128 * PAD_HID + PAD_HID * PAD_OUT)
    bytes_accessed = weight_bytes + B_pad * K_PAD * 2 + B_pad * PAD_OUT * 2

    out_pad = pl.pallas_call(
        _mlp_kernel,
        out_shape=jax.ShapeDtypeStruct((B_pad, PAD_OUT), jnp.bfloat16),
        grid=(grid_b,),
        in_specs=in_specs,
        out_specs=pl.BlockSpec((tile_b, PAD_OUT), lambda i: (i, 0)),
        compiler_params=pltpu.CompilerParams(
            dimension_semantics=("parallel",),
            vmem_limit_bytes=48 * 1024 * 1024),
        cost_estimate=pl.CostEstimate(flops=flops, transcendentals=0,
                                      bytes_accessed=bytes_accessed),
    )(*flat_args)

    # bf16 slab; slicing the real logits only touches B*10 bf16 elements.
    return out_pad[:B, :10]


def init_params(key):
    """PyTorch Linear default init: U(-1/sqrt(in), 1/sqrt(in)) for W and b.
    Weights stored here as (in, out) = W_torch.T."""
    params = []
    for i in range(len(DIMS) - 1):
        fan_in, fan_out = DIMS[i], DIMS[i + 1]
        key, kw, kb = jax.random.split(key, 3)
        bound = 1.0 / jnp.sqrt(fan_in)
        W = jax.random.uniform(kw, (fan_in, fan_out), jnp.float32, -bound, bound)
        b = jax.random.uniform(kb, (fan_out,), jnp.float32, -bound, bound)
        params.append((W, b))
    return params


def reference_forward(x, params, *, bf16_inputs=False):
    """Pure-JAX reference (exact module semantics; optional bf16 matmul inputs)."""
    h = x.reshape(-1, 784).astype(jnp.float32)
    n = len(params)
    for i, (W, b) in enumerate(params):
        if bf16_inputs:
            h = jnp.dot(h.astype(jnp.bfloat16), W.astype(jnp.bfloat16),
                        preferred_element_type=jnp.float32) + b
        else:
            h = h @ W + b
        if i < n - 1:
            h = jnp.maximum(h, 0.0)
    return h


if __name__ == "__main__":
    key = jax.random.PRNGKey(0)
    key, kx = jax.random.split(key)

    # MNIST-like small batch: (B, C, H, W) = (8, 1, 28, 28) -> view(-1, 784)
    x = jax.random.normal(kx, (8, 1, 28, 28), dtype=jnp.float32)
    params = init_params(key)

    # Pack once (bf16 cast + lane padding), reuse on every forward call.
    packed = pack_params(params)

    out = mlp_forward(x, packed)
    out = jax.block_until_ready(out)
    assert out.shape == (8, 10), out.shape

    out_f32 = out.astype(jnp.float32)
    # Tight check vs a bf16-matched reference, loose sanity vs exact f32 math.
    ref_bf16 = reference_forward(x, params, bf16_inputs=True)
    ref_f32 = reference_forward(x, params)
    assert jnp.allclose(out_f32, ref_bf16, atol=3e-2, rtol=3e-2), \
        "mismatch vs bf16 reference"
    assert jnp.allclose(out_f32, ref_f32, atol=1.5e-1, rtol=1.5e-1), \
        "mismatch vs f32 reference"

    print("KERNEL_OK")
</pallas_src>

<mosaic_0001>
module attributes {stable_mosaic.version = 11 : i64} {
  func.func @_mlp_kernel(%arg0: i32, %arg1: memref<8x896xbf16, #tpu.memory_space<vmem>>, %arg2: memref<896x512xbf16, #tpu.memory_space<vmem>>, %arg3: memref<1x512xf32, #tpu.memory_space<vmem>>, %arg4: memref<512x256xbf16, #tpu.memory_space<vmem>>, %arg5: memref<1x256xf32, #tpu.memory_space<vmem>>, %arg6: memref<256x128xbf16, #tpu.memory_space<vmem>>, %arg7: memref<1x128xf32, #tpu.memory_space<vmem>>, %arg8: memref<128x128xbf16, #tpu.memory_space<vmem>>, %arg9: memref<1x128xf32, #tpu.memory_space<vmem>>, %arg10: memref<128x128xbf16, #tpu.memory_space<vmem>>, %arg11: memref<1x128xf32, #tpu.memory_space<vmem>>, %arg12: memref<8x128xbf16, #tpu.memory_space<vmem>>) attributes {dimension_semantics = [#tpu.dimension_semantics<parallel>], iteration_bounds = array<i64: 1>, scalar_prefetch = 0 : i64, scratch_operands = 0 : i64, tpu.core_type = #tpu.core_type<tc>, window_params = [{transform_indices = @transform_0, window_bounds = array<i64: 8, 896>}, {pipeline_mode = #tpu.pipeline_mode<synchronous>, transform_indices = @transform_1, window_bounds = array<i64: 896, 512>}, {pipeline_mode = #tpu.pipeline_mode<synchronous>, transform_indices = @transform_2, window_bounds = array<i64: 1, 512>}, {pipeline_mode = #tpu.pipeline_mode<synchronous>, transform_indices = @transform_3, window_bounds = array<i64: 512, 256>}, {pipeline_mode = #tpu.pipeline_mode<synchronous>, transform_indices = @transform_4, window_bounds = array<i64: 1, 256>}, {pipeline_mode = #tpu.pipeline_mode<synchronous>, transform_indices = @transform_5, window_bounds = array<i64: 256, 128>}, {pipeline_mode = #tpu.pipeline_mode<synchronous>, transform_indices = @transform_6, window_bounds = array<i64: 1, 128>}, {pipeline_mode = #tpu.pipeline_mode<synchronous>, transform_indices = @transform_7, window_bounds = array<i64: 128, 128>}, {pipeline_mode = #tpu.pipeline_mode<synchronous>, transform_indices = @transform_8, window_bounds = array<i64: 1, 128>}, {pipeline_mode = #tpu.pipeline_mode<synchronous>, transform_indices = @transform_9, window_bounds = array<i64: 128, 128>}, {pipeline_mode = #tpu.pipeline_mode<synchronous>, transform_indices = @transform_10, window_bounds = array<i64: 1, 128>}, {transform_indices = @transform_11, window_bounds = array<i64: 8, 128>}]} {
    %c0 = arith.constant 0 : index
    %c0_0 = arith.constant 0 : index
    %0 = vector.load %arg1[%c0, %c0_0] : memref<8x896xbf16, #tpu.memory_space<vmem>>, vector<8x896xbf16>
    %c0_1 = arith.constant 0 : index
    %c0_2 = arith.constant 0 : index
    %1 = vector.load %arg2[%c0_1, %c0_2] : memref<896x512xbf16, #tpu.memory_space<vmem>>, vector<896x512xbf16>
    %cst = arith.constant dense<0.000000e+00> : vector<8x512xf32>
    %2 = tpu.matmul %0, %1, %cst {dimension_numbers = #tpu.dot_dimension_numbers<[1], [0], [0], [1], [0, 0, 1, 1], [], []>} : vector<8x896xbf16>, vector<896x512xbf16>, vector<8x512xf32> -> vector<8x512xf32>
    %c0_3 = arith.constant 0 : index
    %c0_4 = arith.constant 0 : index
    %3 = vector.load %arg3[%c0_3, %c0_4] : memref<1x512xf32, #tpu.memory_space<vmem>>, vector<1x512xf32>
    %4 = vector.broadcast %3 : vector<1x512xf32> to vector<8x512xf32>
    %5 = arith.addf %2, %4 : vector<8x512xf32>
    %cst_5 = arith.constant 0.000000e+00 : f32
    %6 = vector.broadcast %cst_5 : f32 to vector<8x512xf32>
    %7 = arith.maximumf %5, %6 : vector<8x512xf32>
    %8 = arith.truncf %7 : vector<8x512xf32> to vector<8x512xbf16>
    %c0_6 = arith.constant 0 : index
    %c0_7 = arith.constant 0 : index
    %9 = vector.load %arg4[%c0_6, %c0_7] : memref<512x256xbf16, #tpu.memory_space<vmem>>, vector<512x256xbf16>
    %cst_8 = arith.constant dense<0.000000e+00> : vector<8x256xf32>
    %10 = tpu.matmul %8, %9, %cst_8 {dimension_numbers = #tpu.dot_dimension_numbers<[1], [0], [0], [1], [0, 0, 1, 1], [], []>} : vector<8x512xbf16>, vector<512x256xbf16>, vector<8x256xf32> -> vector<8x256xf32>
    %c0_9 = arith.constant 0 : index
    %c0_10 = arith.constant 0 : index
    %11 = vector.load %arg5[%c0_9, %c0_10] : memref<1x256xf32, #tpu.memory_space<vmem>>, vector<1x256xf32>
    %12 = vector.broadcast %11 : vector<1x256xf32> to vector<8x256xf32>
    %13 = arith.addf %10, %12 : vector<8x256xf32>
    %cst_11 = arith.constant 0.000000e+00 : f32
    %14 = vector.broadcast %cst_11 : f32 to vector<8x256xf32>
    %15 = arith.maximumf %13, %14 : vector<8x256xf32>
    %16 = arith.truncf %15 : vector<8x256xf32> to vector<8x256xbf16>
    %c0_12 = arith.constant 0 : index
    %c0_13 = arith.constant 0 : index
    %17 = vector.load %arg6[%c0_12, %c0_13] : memref<256x128xbf16, #tpu.memory_space<vmem>>, vector<256x128xbf16>
    %cst_14 = arith.constant dense<0.000000e+00> : vector<8x128xf32>
    %18 = tpu.matmul %16, %17, %cst_14 {dimension_numbers = #tpu.dot_dimension_numbers<[1], [0], [0], [1], [0, 0, 1, 1], [], []>} : vector<8x256xbf16>, vector<256x128xbf16>, vector<8x128xf32> -> vector<8x128xf32>
    %c0_15 = arith.constant 0 : index
    %c0_16 = arith.constant 0 : index
    %19 = vector.load %arg7[%c0_15, %c0_16] : memref<1x128xf32, #tpu.memory_space<vmem>>, vector<1x128xf32>
    %20 = vector.broadcast %19 : vector<1x128xf32> to vector<8x128xf32>
    %21 = arith.addf %18, %20 : vector<8x128xf32>
    %cst_17 = arith.constant 0.000000e+00 : f32
    %22 = vector.broadcast %cst_17 : f32 to vector<8x128xf32>
    %23 = arith.maximumf %21, %22 : vector<8x128xf32>
    %24 = arith.truncf %23 : vector<8x128xf32> to vector<8x128xbf16>
    %c0_18 = arith.constant 0 : index
    %c0_19 = arith.constant 0 : index
    %25 = vector.load %arg8[%c0_18, %c0_19] : memref<128x128xbf16, #tpu.memory_space<vmem>>, vector<128x128xbf16>
    %cst_20 = arith.constant dense<0.000000e+00> : vector<8x128xf32>
    %26 = tpu.matmul %24, %25, %cst_20 {dimension_numbers = #tpu.dot_dimension_numbers<[1], [0], [0], [1], [0, 0, 1, 1], [], []>} : vector<8x128xbf16>, vector<128x128xbf16>, vector<8x128xf32> -> vector<8x128xf32>
    %c0_21 = arith.constant 0 : index
    %c0_22 = arith.constant 0 : index
    %27 = vector.load %arg9[%c0_21, %c0_22] : memref<1x128xf32, #tpu.memory_space<vmem>>, vector<1x128xf32>
    %28 = vector.broadcast %27 : vector<1x128xf32> to vector<8x128xf32>
    %29 = arith.addf %26, %28 : vector<8x128xf32>
    %cst_23 = arith.constant 0.000000e+00 : f32
    %30 = vector.broadcast %cst_23 : f32 to vector<8x128xf32>
    %31 = arith.maximumf %29, %30 : vector<8x128xf32>
    %32 = arith.truncf %31 : vector<8x128xf32> to vector<8x128xbf16>
    %c0_24 = arith.constant 0 : index
    %c0_25 = arith.constant 0 : index
    %33 = vector.load %arg10[%c0_24, %c0_25] : memref<128x128xbf16, #tpu.memory_space<vmem>>, vector<128x128xbf16>
    %cst_26 = arith.constant dense<0.000000e+00> : vector<8x128xf32>
    %34 = tpu.matmul %32, %33, %cst_26 {dimension_numbers = #tpu.dot_dimension_numbers<[1], [0], [0], [1], [0, 0, 1, 1], [], []>} : vector<8x128xbf16>, vector<128x128xbf16>, vector<8x128xf32> -> vector<8x128xf32>
    %c0_27 = arith.constant 0 : index
    %c0_28 = arith.constant 0 : index
    %35 = vector.load %arg11[%c0_27, %c0_28] : memref<1x128xf32, #tpu.memory_space<vmem>>, vector<1x128xf32>
    %36 = vector.broadcast %35 : vector<1x128xf32> to vector<8x128xf32>
    %37 = arith.addf %34, %36 : vector<8x128xf32>
    %38 = arith.truncf %37 : vector<8x128xf32> to vector<8x128xbf16>
    %c0_29 = arith.constant 0 : index
    %c0_30 = arith.constant 0 : index
    %39 = vector.load %arg12[%c0_29, %c0_30] : memref<8x128xbf16, #tpu.memory_space<vmem>>, vector<8x128xbf16>
    tpu.vector_store %arg12[%c0_29, %c0_30], %38 {strides = array<i32>} : memref<8x128xbf16, #tpu.memory_space<vmem>>, vector<8x128xbf16>,
    return
  }
  func.func @transform_0(%arg0: i32) -> (i32, i32) {
    %c0_i32 = arith.constant 0 : i32
    %c0_i32_0 = arith.constant 0 : i32
    return %arg0, %c0_i32 : i32, i32
  }
  func.func @transform_1(%arg0: i32) -> (i32, i32) {
    %c0_i32 = arith.constant 0 : i32
    %c0_i32_0 = arith.constant 0 : i32
    %c0_i32_1 = arith.constant 0 : i32
    return %c0_i32, %c0_i32_0 : i32, i32
  }
  func.func @transform_2(%arg0: i32) -> (i32, i32) {
    %c0_i32 = arith.constant 0 : i32
    %c0_i32_0 = arith.constant 0 : i32
    %c0_i32_1 = arith.constant 0 : i32
    return %c0_i32, %c0_i32_0 : i32, i32
  }
  func.func @transform_3(%arg0: i32) -> (i32, i32) {
    %c0_i32 = arith.constant 0 : i32
    %c0_i32_0 = arith.constant 0 : i32
    %c0_i32_1 = arith.constant 0 : i32
    return %c0_i32, %c0_i32_0 : i32, i32
  }
  func.func @transform_4(%arg0: i32) -> (i32, i32) {
    %c0_i32 = arith.constant 0 : i32
    %c0_i32_0 = arith.constant 0 : i32
    %c0_i32_1 = arith.constant 0 : i32
    return %c0_i32, %c0_i32_0 : i32, i32
  }
  func.func @transform_5(%arg0: i32) -> (i32, i32) {
    %c0_i32 = arith.constant 0 : i32
    %c0_i32_0 = arith.constant 0 : i32
    %c0_i32_1 = arith.constant 0 : i32
    return %c0_i32, %c0_i32_0 : i32, i32
  }
  func.func @transform_6(%arg0: i32) -> (i32, i32) {
    %c0_i32 = arith.constant 0 : i32
    %c0_i32_0 = arith.constant 0 : i32
    %c0_i32_1 = arith.constant 0 : i32
    return %c0_i32, %c0_i32_0 : i32, i32
  }
  func.func @transform_7(%arg0: i32) -> (i32, i32) {
    %c0_i32 = arith.constant 0 : i32
    %c0_i32_0 = arith.constant 0 : i32
    %c0_i32_1 = arith.constant 0 : i32
    return %c0_i32, %c0_i32_0 : i32, i32
  }
  func.func @transform_8(%arg0: i32) -> (i32, i32) {
    %c0_i32 = arith.constant 0 : i32
    %c0_i32_0 = arith.constant 0 : i32
    %c0_i32_1 = arith.constant 0 : i32
    return %c0_i32, %c0_i32_0 : i32, i32
  }
  func.func @transform_9(%arg0: i32) -> (i32, i32) {
    %c0_i32 = arith.constant 0 : i32
    %c0_i32_0 = arith.constant 0 : i32
    %c0_i32_1 = arith.constant 0 : i32
    return %c0_i32, %c0_i32_0 : i32, i32
  }
  func.func @transform_10(%arg0: i32) -> (i32, i32) {
    %c0_i32 = arith.constant 0 : i32
    %c0_i32_0 = arith.constant 0 : i32
    %c0_i32_1 = arith.constant 0 : i32
    return %c0_i32, %c0_i32_0 : i32, i32
  }
  func.func @transform_11(%arg0: i32) -> (i32, i32) {
    %c0_i32 = arith.constant 0 : i32
    %c0_i32_0 = arith.constant 0 : i32
    return %arg0, %c0_i32 : i32, i32
  }
}

</mosaic_0001>

<bundles_post_ra>
// kernel: mlp_forward.1
= control target key start
LH: loop header
LB: loop body
LE: loop exit
PB: predicated region body
PF: predicated region fallthrough
CT: control target
= control target key end

     0   :  { %16 = vsyncpa [#allocation3], 0  ;;  %s4203_s0 = inlined_call_operand.vmem [shape: bf16[8,896], index: 0, kind: input, shape index: {}]   ;;  %s4204_s1 = inlined_call_operand.hbm [shape: bf16[896,512], index: 1, kind: input, shape index: {}]   ;;  %s4205_s2 = inlined_call_operand.hbm [shape: f32[1,512], index: 2, kind: input, shape index: {}]   ;;  %s4206_s3 = inlined_call_operand.vmem [shape: bf16[512,256], index: 3, kind: input, shape index: {}]   ;;  %s4207_s4 = inlined_call_operand.vmem [shape: f32[1,256], index: 4, kind: input, shape index: {}]   ;;  %s4208_s5 = inlined_call_operand.hbm [shape: bf16[256,128], index: 5, kind: input, shape index: {}]   ;;  %s4209_s6 = inlined_call_operand.vmem [shape: f32[1,128], index: 6, kind: input, shape index: {}]   ;;  %s4210_s7 = inlined_call_operand.vmem [shape: bf16[128,128], index: 7, kind: input, shape index: {}]   ;;  %s4211_s8 = inlined_call_operand.vmem [shape: f32[1,128], index: 8, kind: input, shape index: {}]   ;;  %s4212_s9 = inlined_call_operand.hbm [shape: bf16[128,128], index: 9, kind: input, shape index: {}]   ;;  %s4213_s10 = inlined_call_operand.vmem [shape: f32[1,128], index: 10, kind: input, shape index: {}]   ;;  %s4214_s11 = inlined_call_operand.hbm [shape: bf16[8,128], index: 11, kind: output, shape index: {}]  }
   0x1   :  { %17 = vsyncpa [#allocation6], 0 }
   0x2   :  { %18 = vsyncpa [#allocation9], 0 }
   0x3   :  { %19 = vsyncpa [#allocation4], 0  ;;  %s3771_s17 = smov [#allocation5]   ;;  %s3772_s19 = smov [#allocation2]  }
   0x4   :  { %s40_s18 = sshll.u32 %s3771_s17, 4  ;;  %s27_s20 = sshll.u32 %s3772_s19, 4  ;;  %s41_s18 = int_to_ptr.vmem [resolvable:$true] %s40_s18  ;;  %s3843_s20 = int_to_ptr.vmem [resolvable:$true] %s27_s20 }
   0x5   :  { %s3653_s23 = scalar_lea.hbm %s4205_s2, 64 }
   0x6   :  { %p3654_p0 = scmp.ne.s32.totalorder %s4205_s2, %s3653_s23  ;;  %p3657_p1 = scmp.lt.u32.totalorder %s3653_s23, %s4205_s2 }
   0x8   :  { %p3659_p2 = pnand %p3657_p1, %p3654_p0 }
   0xa   :  { %3662 = shalt.err (!%p3659_p2)
}
   0xb   :  { %s3663_s28 = scalar_lea.vmem %s41_s18, 64  ;;  %p3668_p4 = scmp.lt.s32.totalorder %s41_s18, %s41_s18 }
   0xc   :  { %p3664_p3 = scmp.ne.s32.totalorder %s41_s18, %s3663_s28  ;;  %p3669_p5 = scmp.lt.s32.totalorder %s3663_s28, %s3663_s28 }
   0xe   :  { %p3670_p6 = por %p3669_p5, %p3668_p4 }
  0x10   :  { %p3671_p7 = pnand %p3670_p6, %p3664_p3 }
  0x12   :  { %3674 = shalt.err (!%p3671_p7)
}
  0x13   :  { %43 = dma.hbm_to_vmem [thread:$0]  %s4205_s2, 64, %s41_s18, [#allocation6]  }
  0x14   :  { %s3675_s14 = scalar_lea.hbm %s4204_s1, 28672 }
  0x15   :  { %p3676_p8 = scmp.ne.s32.totalorder %s4204_s1, %s3675_s14  ;;  %p3679_p9 = scmp.lt.u32.totalorder %s3675_s14, %s4204_s1 }
  0x17   :  { %p3681_p10 = pnand %p3679_p9, %p3676_p8 }
  0x19   :  { %3684 = shalt.err (!%p3681_p10)
}
  0x1a   :  { %s3685_s21 = scalar_lea.vmem %s3843_s20, 28672  ;;  %p3690_p12 = scmp.lt.s32.totalorder %s3843_s20, %s3843_s20 }
  0x1b   :  { %p3686_p11 = scmp.ne.s32.totalorder %s3843_s20, %s3685_s21  ;;  %p3691_p13 = scmp.lt.s32.totalorder %s3685_s21, %s3685_s21 }
  0x1d   :  { %p3692_p0 = por %p3691_p13, %p3690_p12 }
  0x1f   :  { %p3693_p1 = pnand %p3692_p0, %p3686_p11 }
  0x21   :  { %3696 = shalt.err (!%p3693_p1)
}
  0x22   :  { %s3773_s2 = smov 256   ;;  %s3774_s18 = smov 16  }
  0x23   :  { %33 = dma.hbm_to_vmem [thread:$0]  %s4204_s1, 28672, %s3843_s20, [#allocation3], %s3773_s2, %s3773_s2, %s3774_s18  }
  0x24   :  { %s3775_s24 = smov [#allocation7]   ;;  %s3697_s28 = scalar_lea.hbm %s4208_s5, 2048 }
  0x25   :  { %s53_s25 = sshll.u32 %s3775_s24, 4  ;;  %p3698_p2 = scmp.ne.s32.totalorder %s4208_s5, %s3697_s28  ;;  %s54_s25 = int_to_ptr.vmem [resolvable:$true] %s53_s25 }
  0x26   :  { %p3701_p3 = scmp.lt.u32.totalorder %s3697_s28, %s4208_s5 }
  0x28   :  { %p3703_p4 = pnand %p3701_p3, %p3698_p2 }
  0x2a   :  { %3706 = shalt.err (!%p3703_p4)
}
  0x2b   :  { %s3707_s14 = scalar_lea.vmem %s54_s25, 2048  ;;  %p3712_p6 = scmp.lt.s32.totalorder %s54_s25, %s54_s25 }
  0x2c   :  { %p3708_p5 = scmp.ne.s32.totalorder %s54_s25, %s3707_s14  ;;  %p3713_p7 = scmp.lt.s32.totalorder %s3707_s14, %s3707_s14 }
  0x2e   :  { %p3714_p8 = por %p3713_p7, %p3712_p6 }
  0x30   :  { %p3715_p9 = pnand %p3714_p8, %p3708_p5 }
  0x32   :  { %3718 = shalt.err (!%p3715_p9)
}
  0x33   :  { %s3776_s1 = smov 64   ;;  %s3777_s20 = smov 4  }
  0x34   :  { %59 = dma.hbm_to_vmem [thread:$0]  %s4208_s5, 2048, %s54_s25, [#allocation6], %s3776_s1, %s3776_s1, %s3777_s20  }
  0x35   :  { %s3778_s17 = smov [#allocation8]   ;;  %s3719_s18 = scalar_lea.hbm %s4212_s9, 1024 }
  0x36   :  { %s71_s19 = sshll.u32 %s3778_s17, 4  ;;  %p3720_p10 = scmp.ne.s32.totalorder %s4212_s9, %s3719_s18  ;;  %s72_s19 = int_to_ptr.vmem [resolvable:$true] %s71_s19 }
  0x37   :  { %p3723_p11 = scmp.lt.u32.totalorder %s3719_s18, %s4212_s9 }
  0x39   :  { %p3725_p12 = pnand %p3723_p11, %p3720_p10 }
  0x3b   :  { %3728 = shalt.err (!%p3725_p12)
}
  0x3c   :  { %s3729_s27 = scalar_lea.vmem %s72_s19, 1024  ;;  %p3734_p0 = scmp.lt.s32.totalorder %s72_s19, %s72_s19 }
  0x3d   :  { %p3730_p13 = scmp.ne.s32.totalorder %s72_s19, %s3729_s27  ;;  %p3735_p1 = scmp.lt.s32.totalorder %s3729_s27, %s3729_s27 }
  0x3f   :  { %p3736_p2 = por %p3735_p1, %p3734_p0 }
  0x41   :  { %p3737_p3 = pnand %p3736_p2, %p3730_p13 }
  0x43   :  { %3740 = shalt.err (!%p3737_p3)
}
  0x44   :  { %77 = dma.hbm_to_vmem [thread:$0]  %s4212_s9, 1024, %s72_s19, [#allocation9], %s3776_s1, %s3776_s1, %s3777_s20  }
  0x45   :  { %3763 = dma.done.wait [#allocation3], 28672  }
  0x46   :  { %3764 = vsyncadd [#allocation3], 4294938624 }
  0x47   :  { %3765 = dma.done.wait [#allocation6], 2112  }
  0x48   :  { %3766 = vsyncadd [#allocation6], 4294965184 }
  0x49   :  { %3767 = dma.done.wait [#allocation9], 1024  }
  0x4a   :  { %3768 = vsyncadd [#allocation9], 4294966272  ;;  %v3182_v0 = vld [vmem:[#allocation2 + $0x4] ss:$16 sps:$4 sm:$0xff]   ;;  %v3184_v1 = vld [vmem:[#allocation2 + $0xc] ss:$16 sps:$4 sm:$0xff]  }
  0x4b   :  { %1488 = vmatprep.subr.bf16.mxu0 %v3182_v0  ;;  %v3186_v2 = vld [vmem:[#allocation2] ss:$16 sps:$4 sm:$0xff]   ;;  %v3187_v3 = vld [vmem:[#allocation2 + $0x8] ss:$16 sps:$4 sm:$0xff]   ;;  %1652 = vmatprep.subr.bf16.mxu1 %v3184_v1  ;;  %v3188_v4 = vld [vmem:[#allocation2 + $0x24] ss:$16 sps:$4 sm:$0xff]  }
  0x4c   :  { %1489 = vmatpush1.bf16.msra.mxu0 %v3186_v2  ;;  %1653 = vmatpush1.bf16.msra.mxu1 %v3187_v3  ;;  %v3190_v5 = vld [vmem:[#allocation2 + $0x2c] ss:$16 sps:$4 sm:$0xff]   ;;  %v3192_v6 = vld [vmem:[#allocation2 + $0x20] ss:$16 sps:$4 sm:$0xff]   ;;  %v3193_v7 = vld [vmem:[#allocation2 + $0x28] ss:$16 sps:$4 sm:$0xff]  }
  0x4d   :  { %1490 = vmatprep.subr.bf16.mxu0 %v3188_v4  ;;  %1654 = vmatprep.subr.bf16.mxu1 %v3190_v5  ;;  %v3194_v8 = vld [vmem:[#allocation2 + $0x44] ss:$16 sps:$4 sm:$0xff]   ;;  %v3196_v9 = vld [vmem:[#allocation2 + $0x4c] ss:$16 sps:$4 sm:$0xff]   ;;  %v3198_v10 = vld [vmem:[#allocation2 + $0x40] ss:$16 sps:$4 sm:$0xff]  }
  0x4e   :  { %v3199_v11 = vld [vmem:[#allocation2 + $0x48] ss:$16 sps:$4 sm:$0xff]   ;;  %v3200_v12 = vld [vmem:[#allocation2 + $0x64] ss:$16 sps:$4 sm:$0xff]   ;;  %v3202_v13 = vld [vmem:[#allocation2 + $0x6c] ss:$16 sps:$4 sm:$0xff]  }
  0x4f   :  { %v3204_v14 = vld [vmem:[#allocation2 + $0x60] ss:$16 sps:$4 sm:$0xff]   ;;  %v3205_v15 = vld [vmem:[#allocation2 + $0x68] ss:$16 sps:$4 sm:$0xff]   ;;  %v3206_v16 = vld [vmem:[#allocation2 + $0x84] ss:$16 sps:$4 sm:$0xff]  }
  0x50   :  { %1491 = vmatpush1.bf16.msra.mxu0 %v3192_v6  ;;  %1655 = vmatpush1.bf16.msra.mxu1 %v3193_v7  ;;  %v3208_v17 = vld [vmem:[#allocation2 + $0x8c] ss:$16 sps:$4 sm:$0xff]   ;;  %v3210_v18 = vld [vmem:[#allocation2 + $0x80] ss:$16 sps:$4 sm:$0xff]   ;;  %v3211_v19 = vld [vmem:[#allocation2 + $0x88] ss:$16 sps:$4 sm:$0xff]  }
  0x51   :  { %1492 = vmatprep.subr.bf16.mxu0 %v3194_v8  ;;  %1656 = vmatprep.subr.bf16.mxu1 %v3196_v9  ;;  %v3212_v20 = vld [vmem:[#allocation2 + $0xa4] ss:$16 sps:$4 sm:$0xff]   ;;  %v3214_v21 = vld [vmem:[#allocation2 + $0xac] ss:$16 sps:$4 sm:$0xff]   ;;  %v3216_v22 = vld [vmem:[#allocation2 + $0xa0] ss:$16 sps:$4 sm:$0xff]  }
  0x52   :  { %v3217_v23 = vld [vmem:[#allocation2 + $0xa8] ss:$16 sps:$4 sm:$0xff]   ;;  %v3218_v24 = vld [vmem:[#allocation2 + $0xc4] ss:$16 sps:$4 sm:$0xff]   ;;  %v3220_v25 = vld [vmem:[#allocation2 + $0xcc] ss:$16 sps:$4 sm:$0xff]  }
  0x53   :  { %v3222_v26 = vld [vmem:[#allocation2 + $0xc0] ss:$16 sps:$4 sm:$0xff]   ;;  %v3223_v27 = vld [vmem:[#allocation2 + $0xc8] ss:$16 sps:$4 sm:$0xff]   ;;  %v3224_v28 = vld [vmem:[#allocation2 + $0xe4] ss:$16 sps:$4 sm:$0xff]  }
  0x54   :  { %1493 = vmatpush1.bf16.msra.mxu0 %v3198_v10  ;;  %1657 = vmatpush1.bf16.msra.mxu1 %v3199_v11  ;;  %v3226_v29 = vld [vmem:[#allocation2 + $0xec] ss:$16 sps:$4 sm:$0xff]   ;;  %v3228_v30 = vld [vmem:[#allocation2 + $0xe0] ss:$16 sps:$4 sm:$0xff]   ;;  %v3229_v31 = vld [vmem:[#allocation2 + $0xe8] ss:$16 sps:$4 sm:$0xff]  }
  0x55   :  { %1494 = vmatprep.subr.bf16.mxu0 %v3200_v12  ;;  %1658 = vmatprep.subr.bf16.mxu1 %v3202_v13  ;;  %v3230_v32 = vld [vmem:[#allocation2 + $0x104] ss:$16 sps:$4 sm:$0xff]   ;;  %v3232_v33 = vld [vmem:[#allocation2 + $0x10c] ss:$16 sps:$4 sm:$0xff]   ;;  %v3234_v34 = vld [vmem:[#allocation2 + $0x100] ss:$16 sps:$4 sm:$0xff]  }
  0x56   :  { %v3235_v35 = vld [vmem:[#allocation2 + $0x108] ss:$16 sps:$4 sm:$0xff]   ;;  %v3236_v36 = vld [vmem:[#allocation2 + $0x124] ss:$16 sps:$4 sm:$0xff]   ;;  %v3238_v37 = vld [vmem:[#allocation2 + $0x12c] ss:$16 sps:$4 sm:$0xff]  }
  0x57   :  { %v3240_v38 = vld [vmem:[#allocation2 + $0x120] ss:$16 sps:$4 sm:$0xff]   ;;  %v3241_v39 = vld [vmem:[#allocation2 + $0x128] ss:$16 sps:$4 sm:$0xff]   ;;  %v3242_v40 = vld [vmem:[#allocation2 + $0x144] ss:$16 sps:$4 sm:$0xff]  }
  0x58   :  { %1495 = vmatpush1.bf16.msra.mxu0 %v3204_v14  ;;  %1659 = vmatpush1.bf16.msra.mxu1 %v3205_v15  ;;  %v3244_v41 = vld [vmem:[#allocation2 + $0x14c] ss:$16 sps:$4 sm:$0xff]   ;;  %v3246_v42 = vld [vmem:[#allocation2 + $0x140] ss:$16 sps:$4 sm:$0xff]   ;;  %v3247_v43 = vld [vmem:[#allocation2 + $0x148] ss:$16 sps:$4 sm:$0xff]  }
  0x59   :  { %1496 = vmatprep.subr.bf16.mxu0 %v3206_v16  ;;  %1660 = vmatprep.subr.bf16.mxu1 %v3208_v17  ;;  %v3248_v44 = vld [vmem:[#allocation2 + $0x164] ss:$16 sps:$4 sm:$0xff]   ;;  %v3250_v45 = vld [vmem:[#allocation2 + $0x16c] ss:$16 sps:$4 sm:$0xff]   ;;  %v3252_v47 = vld [vmem:[#allocation2 + $0x160] ss:$16 sps:$4 sm:$0xff]  }
  0x5a   :  { %v93_v46 = vld [vmem:[%s4203_s0] sm:$0xff]  ;;  %v3253_v49 = vld [vmem:[#allocation2 + $0x168] ss:$16 sps:$4 sm:$0xff]   ;;  %v3256_v51 = vld [vmem:[#allocation2 + $0x18c] ss:$16 sps:$4 sm:$0xff]   ;;  %vm3781_vm0 = vmmov 0  }
  0x5b   :  { %v2727_v48 = vcombine.high %v93_v46, %v93_v46  ;;  %v3254_v50 = vld [vmem:[#allocation2 + $0x184] ss:$16 sps:$4 sm:$0xff]   ;;  %v3258_v52 = vld [vmem:[#allocation2 + $0x180] ss:$16 sps:$4 sm:$0xff]   ;;  %v3259_v53 = vld [vmem:[#allocation2 + $0x188] ss:$16 sps:$4 sm:$0xff]   ;;  %v2726_v4 = vcombine.low %v93_v46, %v93_v46 }
  0x5c   :  { %1497 = vmatpush1.bf16.msra.mxu0 %v3210_v18  ;;  %1661 = vmatpush1.bf16.msra.mxu1 %v3211_v19  ;;  %v3260_v54 = vld [vmem:[#allocation2 + $0x1a4] ss:$16 sps:$4 sm:$0xff]   ;;  %v3262_v55 = vld [vmem:[#allocation2 + $0x1ac] ss:$16 sps:$4 sm:$0xff]   ;;  %v3264_v56 = vld [vmem:[#allocation2 + $0x1a0] ss:$16 sps:$4 sm:$0xff]  }
  0x5d   :  { %1498 = vmatprep.subr.bf16.mxu0 %v3212_v20  ;;  %1662 = vmatprep.subr.bf16.mxu1 %v3214_v21  ;;  %v3265_v57 = vld [vmem:[#allocation2 + $0x1a8] ss:$16 sps:$4 sm:$0xff]   ;;  %v3266_v58 = vld [vmem:[#allocation2 + $0x1c4] ss:$16 sps:$4 sm:$0xff]   ;;  %v3268_v59 = vld [vmem:[#allocation2 + $0x1cc] ss:$16 sps:$4 sm:$0xff]  }
  0x5e   :  { %1520 = vmatprep.mubr.bf16.mxu0 %v2727_v48  ;;  %1684 = vmatprep.mubr.bf16.mxu1 %v2727_v48  ;;  %v3270_v60 = vld [vmem:[#allocation2 + $0x1c0] ss:$16 sps:$4 sm:$0xff]   ;;  %v3271_v61 = vld [vmem:[#allocation2 + $0x1c8] ss:$16 sps:$4 sm:$0xff]   ;;  %v3272_v62 = vld [vmem:[#allocation2 + $0x1e4] ss:$16 sps:$4 sm:$0xff]  }
  0x5f   :  { %v3274_v63 = vld [vmem:[#allocation2 + $0x1ec] ss:$16 sps:$4 sm:$0xff]   ;;  %v3276_v0 = vld [vmem:[#allocation2 + $0x1e0] ss:$16 sps:$4 sm:$0xff]   ;;  %v3277_v1 = vld [vmem:[#allocation2 + $0x1e8] ss:$16 sps:$4 sm:$0xff]  }
  0x60   :  { %1499 = vmatpush1.bf16.msra.mxu0 %v3216_v22  ;;  %1663 = vmatpush1.bf16.msra.mxu1 %v3217_v23  ;;  %v3282_v2 = vld [vmem:[#allocation2 + $0x204] ss:$16 sps:$4 sm:$0xff]   ;;  %v3285_v3 = vld [vmem:[#allocation2 + $0x20c] ss:$16 sps:$4 sm:$0xff]   ;;  %v3280_v5 = vld [vmem:[#allocation2 + $0x200] ss:$16 sps:$4 sm:$0xff]  }
  0x61   :  { %1500 = vmatprep.subr.bf16.mxu0 %v3218_v24  ;;  %1664 = vmatprep.subr.bf16.mxu1 %v3220_v25  ;;  %v3283_v6 = vld [vmem:[#allocation2 + $0x208] ss:$16 sps:$4 sm:$0xff]   ;;  %v3288_v7 = vld [vmem:[#allocation2 + $0x224] ss:$16 sps:$4 sm:$0xff]   ;;  %v3291_v8 = vld [vmem:[#allocation2 + $0x22c] ss:$16 sps:$4 sm:$0xff]  }
  0x62   :  { %v3286_v9 = vld [vmem:[#allocation2 + $0x220] ss:$16 sps:$4 sm:$0xff]   ;;  %v3289_v10 = vld [vmem:[#allocation2 + $0x228] ss:$16 sps:$4 sm:$0xff]   ;;  %v3294_v11 = vld [vmem:[#allocation2 + $0x244] ss:$16 sps:$4 sm:$0xff]  }
  0x63   :  { %v3297_v12 = vld [vmem:[#allocation2 + $0x24c] ss:$16 sps:$4 sm:$0xff]   ;;  %v3292_v13 = vld [vmem:[#allocation2 + $0x240] ss:$16 sps:$4 sm:$0xff]   ;;  %v3295_v14 = vld [vmem:[#allocation2 + $0x248] ss:$16 sps:$4 sm:$0xff]  }
  0x64   :  { %1501 = vmatpush1.bf16.msra.mxu0 %v3222_v26  ;;  %1665 = vmatpush1.bf16.msra.mxu1 %v3223_v27  ;;  %v3300_v15 = vld [vmem:[#allocation2 + $0x264] ss:$16 sps:$4 sm:$0xff]   ;;  %v3303_v16 = vld [vmem:[#allocation2 + $0x26c] ss:$16 sps:$4 sm:$0xff]   ;;  %v3298_v17 = vld [vmem:[#allocation2 + $0x260] ss:$16 sps:$4 sm:$0xff]  }
  0x65   :  { %1502 = vmatprep.subr.bf16.mxu0 %v3224_v28  ;;  %1666 = vmatprep.subr.bf16.mxu1 %v3226_v29  ;;  %v3301_v18 = vld [vmem:[#allocation2 + $0x268] ss:$16 sps:$4 sm:$0xff]   ;;  %v3306_v19 = vld [vmem:[#allocation2 + $0x284] ss:$16 sps:$4 sm:$0xff]   ;;  %v3309_v20 = vld [vmem:[#allocation2 + $0x28c] ss:$16 sps:$4 sm:$0xff]  }
  0x66   :  { %v3304_v21 = vld [vmem:[#allocation2 + $0x280] ss:$16 sps:$4 sm:$0xff]   ;;  %v3307_v22 = vld [vmem:[#allocation2 + $0x288] ss:$16 sps:$4 sm:$0xff]   ;;  %v3312_v23 = vld [vmem:[#allocation2 + $0x2a4] ss:$16 sps:$4 sm:$0xff]  }
  0x67   :  { %v3315_v24 = vld [vmem:[#allocation2 + $0x2ac] ss:$16 sps:$4 sm:$0xff]   ;;  %v3310_v25 = vld [vmem:[#allocation2 + $0x2a0] ss:$16 sps:$4 sm:$0xff]   ;;  %v3313_v26 = vld [vmem:[#allocation2 + $0x2a8] ss:$16 sps:$4 sm:$0xff]  }
  0x68   :  { %1503 = vmatpush1.bf16.msra.mxu0 %v3228_v30  ;;  %1667 = vmatpush1.bf16.msra.mxu1 %v3229_v31  ;;  %v3318_v27 = vld [vmem:[#allocation2 + $0x2c4] ss:$16 sps:$4 sm:$0xff]   ;;  %v3321_v28 = vld [vmem:[#allocation2 + $0x2cc] ss:$16 sps:$4 sm:$0xff]   ;;  %v3316_v31 = vld [vmem:[#allocation2 + $0x2c0] ss:$16 sps:$4 sm:$0xff]  }
  0x69   :  { %1504 = vmatprep.subr.bf16.mxu0 %v3230_v32  ;;  %1668 = vmatprep.subr.bf16.mxu1 %v3232_v33  ;;  %v3904_v29 = vld [vmem:[%s4203_s0 + $0x8] sm:$0xff]  ;;  %v3324_v33 = vld [vmem:[#allocation2 + $0x2e4] ss:$16 sps:$4 sm:$0xff]   ;;  %s3782_s19 = smov [#allocation10]  }
  0x6a   :  { %v2729_v30 = vcombine.high %v3904_v29, %v3904_v29  ;;  %v3319_v32 = vld [vmem:[#allocation2 + $0x2c8] ss:$16 sps:$4 sm:$0xff]   ;;  %v3345_v46 = vld [vmem:[#allocation2 + $0x34c] ss:$16 sps:$4 sm:$0xff]   ;;  %s2715_s21 = sshll.u32 %s3782_s19, 4  ;;  %s2716_s21 = int_to_ptr.vmem [resolvable:$true] %s2715_s21 }
  0x6b   :  { %v3343_v48 = vld [vmem:[#allocation2 + $0x348] ss:$16 sps:$4 sm:$0xff]   ;;  %p3746_p5 = scmp.lt.s32.totalorder %s2716_s21, %s2716_s21 }
  0x6c   :  { %1505 = vmatpush1.bf16.msra.mxu0 %v3234_v34  ;;  %1669 = vmatpush1.bf16.msra.mxu1 %v3235_v35  ;;  %v3327_v34 = vld [vmem:[#allocation2 + $0x2ec] ss:$16 sps:$4 sm:$0xff]   ;;  %v3322_v35 = vld [vmem:[#allocation2 + $0x2e0] ss:$16 sps:$4 sm:$0xff]  }
  0x6d   :  { %1506 = vmatprep.subr.bf16.mxu0 %v3236_v36  ;;  %1670 = vmatprep.subr.bf16.mxu1 %v3238_v37  ;;  %v3325_v36 = vld [vmem:[#allocation2 + $0x2e8] ss:$16 sps:$4 sm:$0xff]   ;;  %v3330_v37 = vld [vmem:[#allocation2 + $0x304] ss:$16 sps:$4 sm:$0xff]  }
  0x70   :  { %1507 = vmatpush1.bf16.msra.mxu0 %v3240_v38  ;;  %1671 = vmatpush1.bf16.msra.mxu1 %v3241_v39  ;;  %v3333_v38 = vld [vmem:[#allocation2 + $0x30c] ss:$16 sps:$4 sm:$0xff]   ;;  %v3328_v39 = vld [vmem:[#allocation2 + $0x300] ss:$16 sps:$4 sm:$0xff]  }
  0x71   :  { %1508 = vmatprep.subr.bf16.mxu0 %v3242_v40  ;;  %1672 = vmatprep.subr.bf16.mxu1 %v3244_v41  ;;  %v3331_v40 = vld [vmem:[#allocation2 + $0x308] ss:$16 sps:$4 sm:$0xff]   ;;  %v3336_v41 = vld [vmem:[#allocation2 + $0x324] ss:$16 sps:$4 sm:$0xff]  }
  0x74   :  { %1509 = vmatpush1.bf16.msra.mxu0 %v3246_v42  ;;  %1673 = vmatpush1.bf16.msra.mxu1 %v3247_v43  ;;  %v3339_v42 = vld [vmem:[#allocation2 + $0x32c] ss:$16 sps:$4 sm:$0xff]   ;;  %v3334_v43 = vld [vmem:[#allocation2 + $0x320] ss:$16 sps:$4 sm:$0xff]  }
  0x75   :  { %1510 = vmatprep.subr.bf16.mxu0 %v3248_v44  ;;  %1674 = vmatprep.subr.bf16.mxu1 %v3250_v45  ;;  %v3337_v44 = vld [vmem:[#allocation2 + $0x328] ss:$16 sps:$4 sm:$0xff]   ;;  %v3342_v45 = vld [vmem:[#allocation2 + $0x344] ss:$16 sps:$4 sm:$0xff]  }
  0x78   :  { %1511 = vmatpush1.bf16.msra.mxu0 %v3252_v47  ;;  %1675 = vmatpush1.bf16.msra.mxu1 %v3253_v49  ;;  %v3340_v47 = vld [vmem:[#allocation2 + $0x340] ss:$16 sps:$4 sm:$0xff]   ;;  %v3348_v49 = vld [vmem:[#allocation2 + $0x364] ss:$16 sps:$4 sm:$0xff]  }
  0x79   :  { %1512 = vmatprep.subr.bf16.mxu0 %v3254_v50  ;;  %1676 = vmatprep.subr.bf16.mxu1 %v3256_v51  ;;  %v3351_v50 = vld [vmem:[#allocation2 + $0x36c] ss:$16 sps:$4 sm:$0xff]   ;;  %v3346_v51 = vld [vmem:[#allocation2 + $0x360] ss:$16 sps:$4 sm:$0xff]  }
  0x7c   :  { %1513 = vmatpush1.bf16.msra.mxu0 %v3258_v52  ;;  %1677 = vmatpush1.bf16.msra.mxu1 %v3259_v53  ;;  %v3349_v52 = vld [vmem:[#allocation2 + $0x368] ss:$16 sps:$4 sm:$0xff]   ;;  %v3354_v53 = vld [vmem:[#allocation2 + $0x384] ss:$16 sps:$4 sm:$0xff]  }
  0x7d   :  { %1514 = vmatprep.subr.bf16.mxu0 %v3260_v54  ;;  %1678 = vmatprep.subr.bf16.mxu1 %v3262_v55  ;;  %v3357_v54 = vld [vmem:[#allocation2 + $0x38c] ss:$16 sps:$4 sm:$0xff]   ;;  %v3352_v55 = vld [vmem:[#allocation2 + $0x380] ss:$16 sps:$4 sm:$0xff]  }
  0x80   :  { %1515 = vmatpush1.bf16.msra.mxu0 %v3264_v56  ;;  %1679 = vmatpush1.bf16.msra.mxu1 %v3265_v57  ;;  %v3355_v56 = vld [vmem:[#allocation2 + $0x388] ss:$16 sps:$4 sm:$0xff]   ;;  %v3360_v57 = vld [vmem:[#allocation2 + $0x3a4] ss:$16 sps:$4 sm:$0xff]  }
  0x81   :  { %1516 = vmatprep.subr.bf16.mxu0 %v3266_v58  ;;  %1680 = vmatprep.subr.bf16.mxu1 %v3268_v59  ;;  %v3363_v58 = vld [vmem:[#allocation2 + $0x3ac] ss:$16 sps:$4 sm:$0xff]   ;;  %v3358_v59 = vld [vmem:[#allocation2 + $0x3a0] ss:$16 sps:$4 sm:$0xff]  }
  0x84   :  { %1517 = vmatpush1.bf16.msra.mxu0 %v3270_v60  ;;  %1681 = vmatpush1.bf16.msra.mxu1 %v3271_v61  ;;  %v3361_v60 = vld [vmem:[#allocation2 + $0x3a8] ss:$16 sps:$4 sm:$0xff]   ;;  %v3366_v61 = vld [vmem:[#allocation2 + $0x3c4] ss:$16 sps:$4 sm:$0xff]  }
  0x85   :  { %1518 = vmatprep.subr.bf16.mxu0 %v3272_v62  ;;  %1682 = vmatprep.subr.bf16.mxu1 %v3274_v63  ;;  %v3369_v62 = vld [vmem:[#allocation2 + $0x3cc] ss:$16 sps:$4 sm:$0xff]   ;;  %v3364_v63 = vld [vmem:[#allocation2 + $0x3c0] ss:$16 sps:$4 sm:$0xff]  }
  0x88   :  { %1519 = vmatpush1.bf16.msra.mxu0 %v3276_v0  ;;  %1683 = vmatpush1.bf16.msra.mxu1 %v3277_v1  ;;  %v3367_v0 = vld [vmem:[#allocation2 + $0x3c8] ss:$16 sps:$4 sm:$0xff]   ;;  %v3372_v1 = vld [vmem:[#allocation2 + $0x3e4] ss:$16 sps:$4 sm:$0xff]  }
  0x89   :  { %1529 = vmatprep.subr.bf16.mxu0 %v3282_v2  ;;  %1693 = vmatprep.subr.bf16.mxu1 %v3285_v3  ;;  %v3375_v2 = vld [vmem:[#allocation2 + $0x3ec] ss:$16 sps:$4 sm:$0xff]   ;;  %v3370_v3 = vld [vmem:[#allocation2 + $0x3e0] ss:$16 sps:$4 sm:$0xff]  }
  0x8b   :  { %1521 = vmatmul.mubr.bf16.vlgmr.msra.gmra.mrb[0].mxu0 %v2726_v4  ;;  %1685 = vmatmul.mubr.bf16.vlgmr.msra.gmra.mrb[0].mxu1 %v2726_v4  ;;  %v3373_v4 = vld [vmem:[#allocation2 + $0x3e8] ss:$16 sps:$4 sm:$0xff]  }
  0x8c   :  { %1530 = vmatpush1.bf16.msra.mxu0 %v3280_v5  ;;  %1694 = vmatpush1.bf16.msra.mxu1 %v3283_v6  ;;  %v3380_v5 = vld [vmem:[#allocation2 + $0x404] ss:$16 sps:$4 sm:$0xff]   ;;  %v3383_v6 = vld [vmem:[#allocation2 + $0x40c] ss:$16 sps:$4 sm:$0xff]  }
  0x8d   :  { %1531 = vmatprep.subr.bf16.mxu0 %v3288_v7  ;;  %1695 = vmatprep.subr.bf16.mxu1 %v3291_v8  ;;  %v2728_v7 = vcombine.low %v3904_v29, %v3904_v29  ;;  %v3378_v8 = vld [vmem:[#allocation2 + $0x400] ss:$16 sps:$4 sm:$0xff]   ;;  %v3413_v29 = vld [vmem:[#allocation2 + $0x4ac] ss:$16 sps:$4 sm:$0xff]  }
  0x8e   :  { %1561 = vmatprep.mubr.bf16.mxu0 %v2729_v30  ;;  %1725 = vmatprep.mubr.bf16.mxu1 %v2729_v30  ;;  %v3408_v30 = vld [vmem:[#allocation2 + $0x4a0] ss:$16 sps:$4 sm:$0xff]  }
  0x90   :  { %1532 = vmatpush1.bf16.msra.mxu0 %v3286_v9  ;;  %1696 = vmatpush1.bf16.msra.mxu1 %v3289_v10  ;;  %v3381_v9 = vld [vmem:[#allocation2 + $0x408] ss:$16 sps:$4 sm:$0xff]   ;;  %v3386_v10 = vld [vmem:[#allocation2 + $0x424] ss:$16 sps:$4 sm:$0xff]  }
  0x91   :  { %1533 = vmatprep.subr.bf16.mxu0 %v3294_v11  ;;  %1697 = vmatprep.subr.bf16.mxu1 %v3297_v12  ;;  %v3913_v11 = vld [vmem:[%s4203_s0 + $0x10] sm:$0xff]  ;;  %v3389_v12 = vld [vmem:[#allocation2 + $0x42c] ss:$16 sps:$4 sm:$0xff]  }
  0x94   :  { %1534 = vmatpush1.bf16.msra.mxu0 %v3292_v13  ;;  %1698 = vmatpush1.bf16.msra.mxu1 %v3295_v14  ;;  %v2731_v13 = vcombine.high %v3913_v11, %v3913_v11  ;;  %v3384_v14 = vld [vmem:[#allocation2 + $0x420] ss:$16 sps:$4 sm:$0xff]  }
  0x95   :  { %1535 = vmatprep.subr.bf16.mxu0 %v3300_v15  ;;  %1699 = vmatprep.subr.bf16.mxu1 %v3303_v16  ;;  %v3387_v15 = vld [vmem:[#allocation2 + $0x428] ss:$16 sps:$4 sm:$0xff]   ;;  %v3392_v16 = vld [vmem:[#allocation2 + $0x444] ss:$16 sps:$4 sm:$0xff]  }
  0x98   :  { %1536 = vmatpush1.bf16.msra.mxu0 %v3298_v17  ;;  %1700 = vmatpush1.bf16.msra.mxu1 %v3301_v18  ;;  %v3395_v17 = vld [vmem:[#allocation2 + $0x44c] ss:$16 sps:$4 sm:$0xff]   ;;  %v3390_v18 = vld [vmem:[#allocation2 + $0x440] ss:$16 sps:$4 sm:$0xff]  }
  0x99   :  { %1537 = vmatprep.subr.bf16.mxu0 %v3306_v19  ;;  %1701 = vmatprep.subr.bf16.mxu1 %v3309_v20  ;;  %v3393_v19 = vld [vmem:[#allocation2 + $0x448] ss:$16 sps:$4 sm:$0xff]   ;;  %v3398_v20 = vld [vmem:[#allocation2 + $0x464] ss:$16 sps:$4 sm:$0xff]  }
  0x9c   :  { %1538 = vmatpush1.bf16.msra.mxu0 %v3304_v21  ;;  %1702 = vmatpush1.bf16.msra.mxu1 %v3307_v22  ;;  %v3401_v21 = vld [vmem:[#allocation2 + $0x46c] ss:$16 sps:$4 sm:$0xff]   ;;  %v3396_v22 = vld [vmem:[#allocation2 + $0x460] ss:$16 sps:$4 sm:$0xff]  }
  0x9d   :  { %1539 = vmatprep.subr.bf16.mxu0 %v3312_v23  ;;  %1703 = vmatprep.subr.bf16.mxu1 %v3315_v24  ;;  %v3399_v23 = vld [vmem:[#allocation2 + $0x468] ss:$16 sps:$4 sm:$0xff]   ;;  %v3404_v24 = vld [vmem:[#allocation2 + $0x484] ss:$16 sps:$4 sm:$0xff]  }
  0xa0   :  { %1540 = vmatpush1.bf16.msra.mxu0 %v3310_v25  ;;  %1704 = vmatpush1.bf16.msra.mxu1 %v3313_v26  ;;  %v3407_v25 = vld [vmem:[#allocation2 + $0x48c] ss:$16 sps:$4 sm:$0xff]   ;;  %v3402_v26 = vld [vmem:[#allocation2 + $0x480] ss:$16 sps:$4 sm:$0xff]  }
  0xa1   :  { %1541 = vmatprep.subr.bf16.mxu0 %v3318_v27  ;;  %1705 = vmatprep.subr.bf16.mxu1 %v3321_v28  ;;  %v3405_v27 = vld [vmem:[#allocation2 + $0x488] ss:$16 sps:$4 sm:$0xff]   ;;  %v3410_v28 = vld [vmem:[#allocation2 + $0x4a4] ss:$16 sps:$4 sm:$0xff]  }
  0xa4   :  { %1542 = vmatpush1.bf16.msra.mxu0 %v3316_v31  ;;  %1706 = vmatpush1.bf16.msra.mxu1 %v3319_v32  ;;  %v3411_v31 = vld [vmem:[#allocation2 + $0x4a8] ss:$16 sps:$4 sm:$0xff]   ;;  %v3416_v32 = vld [vmem:[#allocation2 + $0x4c4] ss:$16 sps:$4 sm:$0xff]  }
  0xa5   :  { %1543 = vmatprep.subr.bf16.mxu0 %v3324_v33  ;;  %1707 = vmatprep.subr.bf16.mxu1 %v3327_v34  ;;  %v3419_v33 = vld [vmem:[#allocation2 + $0x4cc] ss:$16 sps:$4 sm:$0xff]   ;;  %v3414_v34 = vld [vmem:[#allocation2 + $0x4c0] ss:$16 sps:$4 sm:$0xff]  }
  0xa8   :  { %1544 = vmatpush1.bf16.msra.mxu0 %v3322_v35  ;;  %1708 = vmatpush1.bf16.msra.mxu1 %v3325_v36  ;;  %v3417_v35 = vld [vmem:[#allocation2 + $0x4c8] ss:$16 sps:$4 sm:$0xff]   ;;  %v3422_v36 = vld [vmem:[#allocation2 + $0x4e4] ss:$16 sps:$4 sm:$0xff]  }
  0xa9   :  { %1545 = vmatprep.subr.bf16.mxu0 %v3330_v37  ;;  %1709 = vmatprep.subr.bf16.mxu1 %v3333_v38  ;;  %v3425_v37 = vld [vmem:[#allocation2 + $0x4ec] ss:$16 sps:$4 sm:$0xff]   ;;  %v3420_v38 = vld [vmem:[#allocation2 + $0x4e0] ss:$16 sps:$4 sm:$0xff]  }
  0xac   :  { %1546 = vmatpush1.bf16.msra.mxu0 %v3328_v39  ;;  %1710 = vmatpush1.bf16.msra.mxu1 %v3331_v40  ;;  %v3423_v39 = vld [vmem:[#allocation2 + $0x4e8] ss:$16 sps:$4 sm:$0xff]   ;;  %v3428_v40 = vld [vmem:[#allocation2 + $0x504] ss:$16 sps:$4 sm:$0xff]  }
  0xad   :  { %1547 = vmatprep.subr.bf16.mxu0 %v3336_v41  ;;  %1711 = vmatprep.subr.bf16.mxu1 %v3339_v42  ;;  %v3431_v41 = vld [vmem:[#allocation2 + $0x50c] ss:$16 sps:$4 sm:$0xff]   ;;  %v3426_v42 = vld [vmem:[#allocation2 + $0x500] ss:$16 sps:$4 sm:$0xff]  }
  0xb0   :  { %1548 = vmatpush1.bf16.msra.mxu0 %v3334_v43  ;;  %1712 = vmatpush1.bf16.msra.mxu1 %v3337_v44  ;;  %v3429_v43 = vld [vmem:[#allocation2 + $0x508] ss:$16 sps:$4 sm:$0xff]   ;;  %v3434_v44 = vld [vmem:[#allocation2 + $0x524] ss:$16 sps:$4 sm:$0xff]  }
  0xb1   :  { %1549 = vmatprep.subr.bf16.mxu0 %v3342_v45  ;;  %1713 = vmatprep.subr.bf16.mxu1 %v3345_v46  ;;  %v3437_v45 = vld [vmem:[#allocation2 + $0x52c] ss:$16 sps:$4 sm:$0xff]   ;;  %v3432_v46 = vld [vmem:[#allocation2 + $0x520] ss:$16 sps:$4 sm:$0xff]  }
  0xb4   :  { %1550 = vmatpush1.bf16.msra.mxu0 %v3340_v47  ;;  %1714 = vmatpush1.bf16.msra.mxu1 %v3343_v48  ;;  %v3435_v47 = vld [vmem:[#allocation2 + $0x528] ss:$16 sps:$4 sm:$0xff]   ;;  %v3440_v48 = vld [vmem:[#allocation2 + $0x544] ss:$16 sps:$4 sm:$0xff]  }
  0xb5   :  { %1551 = vmatprep.subr.bf16.mxu0 %v3348_v49  ;;  %1715 = vmatprep.subr.bf16.mxu1 %v3351_v50  ;;  %v3443_v49 = vld [vmem:[#allocation2 + $0x54c] ss:$16 sps:$4 sm:$0xff]   ;;  %v3438_v50 = vld [vmem:[#allocation2 + $0x540] ss:$16 sps:$4 sm:$0xff]  }
  0xb8   :  { %1552 = vmatpush1.bf16.msra.mxu0 %v3346_v51  ;;  %1716 = vmatpush1.bf16.msra.mxu1 %v3349_v52  ;;  %v3441_v51 = vld [vmem:[#allocation2 + $0x548] ss:$16 sps:$4 sm:$0xff]   ;;  %v3446_v52 = vld [vmem:[#allocation2 + $0x564] ss:$16 sps:$4 sm:$0xff]  }
  0xb9   :  { %1553 = vmatprep.subr.bf16.mxu0 %v3354_v53  ;;  %1717 = vmatprep.subr.bf16.mxu1 %v3357_v54  ;;  %v3449_v53 = vld [vmem:[#allocation2 + $0x56c] ss:$16 sps:$4 sm:$0xff]   ;;  %v3444_v54 = vld [vmem:[#allocation2 + $0x560] ss:$16 sps:$4 sm:$0xff]  }
  0xbc   :  { %1554 = vmatpush1.bf16.msra.mxu0 %v3352_v55  ;;  %1718 = vmatpush1.bf16.msra.mxu1 %v3355_v56  ;;  %v3447_v55 = vld [vmem:[#allocation2 + $0x568] ss:$16 sps:$4 sm:$0xff]   ;;  %v3452_v56 = vld [vmem:[#allocation2 + $0x584] ss:$16 sps:$4 sm:$0xff]  }
  0xbd   :  { %1555 = vmatprep.subr.bf16.mxu0 %v3360_v57  ;;  %1719 = vmatprep.subr.bf16.mxu1 %v3363_v58  ;;  %v3455_v57 = vld [vmem:[#allocation2 + $0x58c] ss:$16 sps:$4 sm:$0xff]   ;;  %v3450_v58 = vld [vmem:[#allocation2 + $0x580] ss:$16 sps:$4 sm:$0xff]  }
  0xc0   :  { %1556 = vmatpush1.bf16.msra.mxu0 %v3358_v59  ;;  %1720 = vmatpush1.bf16.msra.mxu1 %v3361_v60  ;;  %v3453_v59 = vld [vmem:[#allocation2 + $0x588] ss:$16 sps:$4 sm:$0xff]   ;;  %v3458_v60 = vld [vmem:[#allocation2 + $0x5a4] ss:$16 sps:$4 sm:$0xff]  }
  0xc1   :  { %1557 = vmatprep.subr.bf16.mxu0 %v3366_v61  ;;  %1721 = vmatprep.subr.bf16.mxu1 %v3369_v62  ;;  %v3461_v61 = vld [vmem:[#allocation2 + $0x5ac] ss:$16 sps:$4 sm:$0xff]   ;;  %v3456_v62 = vld [vmem:[#allocation2 + $0x5a0] ss:$16 sps:$4 sm:$0xff]  }
  0xc4   :  { %1558 = vmatpush1.bf16.msra.mxu0 %v3364_v63  ;;  %1722 = vmatpush1.bf16.msra.mxu1 %v3367_v0  ;;  %v3459_v63 = vld [vmem:[#allocation2 + $0x5a8] ss:$16 sps:$4 sm:$0xff]   ;;  %v3464_v0 = vld [vmem:[#allocation2 + $0x5c4] ss:$16 sps:$4 sm:$0xff]  }
  0xc5   :  { %1559 = vmatprep.subr.bf16.mxu0 %v3372_v1  ;;  %1723 = vmatprep.subr.bf16.mxu1 %v3375_v2  ;;  %v3467_v1 = vld [vmem:[#allocation2 + $0x5cc] ss:$16 sps:$4 sm:$0xff]   ;;  %v3462_v2 = vld [vmem:[#allocation2 + $0x5c0] ss:$16 sps:$4 sm:$0xff]  }
  0xc8   :  { %1560 = vmatpush1.bf16.msra.mxu0 %v3370_v3  ;;  %1724 = vmatpush1.bf16.msra.mxu1 %v3373_v4  ;;  %v3465_v3 = vld [vmem:[#allocation2 + $0x5c8] ss:$16 sps:$4 sm:$0xff]   ;;  %v3470_v4 = vld [vmem:[#allocation2 + $0x5e4] ss:$16 sps:$4 sm:$0xff]  }
  0xc9   :  { %1570 = vmatprep.subr.bf16.mxu0 %v3380_v5  ;;  %1734 = vmatprep.subr.bf16.mxu1 %v3383_v6  ;;  %v3473_v5 = vld [vmem:[#allocation2 + $0x5ec] ss:$16 sps:$4 sm:$0xff]   ;;  %v3468_v6 = vld [vmem:[#allocation2 + $0x5e0] ss:$16 sps:$4 sm:$0xff]  }
  0xcb   :  { %1562 = vmatmul.mubr.bf16.vlgmr.msra.gmra.mrb[0].mxu0 %v2728_v7  ;;  %1726 = vmatmul.mubr.bf16.vlgmr.msra.gmra.mrb[0].mxu1 %v2728_v7  ;;  %v3471_v7 = vld [vmem:[#allocation2 + $0x5e8] ss:$16 sps:$4 sm:$0xff]  }
  0xcc   :  { %1571 = vmatpush1.bf16.msra.mxu0 %v3378_v8  ;;  %1735 = vmatpush1.bf16.msra.mxu1 %v3381_v9  ;;  %v3478_v8 = vld [vmem:[#allocation2 + $0x604] ss:$16 sps:$4 sm:$0xff]   ;;  %v3481_v9 = vld [vmem:[#allocation2 + $0x60c] ss:$16 sps:$4 sm:$0xff]  }
  0xcd   :  { %1572 = vmatprep.subr.bf16.mxu0 %v3386_v10  ;;  %1736 = vmatprep.subr.bf16.mxu1 %v3389_v12  ;;  %v3476_v10 = vld [vmem:[#allocation2 + $0x600] ss:$16 sps:$4 sm:$0xff]   ;;  %v3479_v12 = vld [vmem:[#allocation2 + $0x608] ss:$16 sps:$4 sm:$0xff]  }
  0xce   :  { %1602 = vmatprep.mubr.bf16.mxu0 %v2731_v13  ;;  %1766 = vmatprep.mubr.bf16.mxu1 %v2731_v13  ;;  %v2730_v13 = vcombine.low %v3913_v11, %v3913_v11  ;;  %v3496_v11 = vld [vmem:[#allocation2 + $0x664] ss:$16 sps:$4 sm:$0xff]  }
  0xd0   :  { %1573 = vmatpush1.bf16.msra.mxu0 %v3384_v14  ;;  %1737 = vmatpush1.bf16.msra.mxu1 %v3387_v15  ;;  %v3484_v14 = vld [vmem:[#allocation2 + $0x624] ss:$16 sps:$4 sm:$0xff]   ;;  %v3487_v15 = vld [vmem:[#allocation2 + $0x62c] ss:$16 sps:$4 sm:$0xff]  }
  0xd1   :  { %1574 = vmatprep.subr.bf16.mxu0 %v3392_v16  ;;  %1738 = vmatprep.subr.bf16.mxu1 %v3395_v17  ;;  %v3482_v16 = vld [vmem:[#allocation2 + $0x620] ss:$16 sps:$4 sm:$0xff]   ;;  %v3485_v17 = vld [vmem:[#allocation2 + $0x628] ss:$16 sps:$4 sm:$0xff]  }
  0xd4   :  { %1575 = vmatpush1.bf16.msra.mxu0 %v3390_v18  ;;  %1739 = vmatpush1.bf16.msra.mxu1 %v3393_v19  ;;  %v3490_v18 = vld [vmem:[#allocation2 + $0x644] ss:$16 sps:$4 sm:$0xff]   ;;  %v3493_v19 = vld [vmem:[#allocation2 + $0x64c] ss:$16 sps:$4 sm:$0xff]  }
  0xd5   :  { %1576 = vmatprep.subr.bf16.mxu0 %v3398_v20  ;;  %1740 = vmatprep.subr.bf16.mxu1 %v3401_v21  ;;  %v3488_v20 = vld [vmem:[#allocation2 + $0x640] ss:$16 sps:$4 sm:$0xff]   ;;  %v3491_v21 = vld [vmem:[#allocation2 + $0x648] ss:$16 sps:$4 sm:$0xff]  }
  0xd8   :  { %1577 = vmatpush1.bf16.msra.mxu0 %v3396_v22  ;;  %1741 = vmatpush1.bf16.msra.mxu1 %v3399_v23  ;;  %v3779_v22 = vmov 0   ;;  %v3499_v23 = vld [vmem:[#allocation2 + $0x66c] ss:$16 sps:$4 sm:$0xff]  }
  0xd9   :  { %1578 = vmatprep.subr.bf16.mxu0 %v3404_v24  ;;  %1742 = vmatprep.subr.bf16.mxu1 %v3407_v25  ;;  %v3494_v24 = vld [vmem:[#allocation2 + $0x660] ss:$16 sps:$4 sm:$0xff]   ;;  %v3497_v25 = vld [vmem:[#allocation2 + $0x668] ss:$16 sps:$4 sm:$0xff]  }
  0xdc   :  { %1579 = vmatpush1.bf16.msra.mxu0 %v3402_v26  ;;  %1743 = vmatpush1.bf16.msra.mxu1 %v3405_v27  ;;  %v3502_v26 = vld [vmem:[#allocation2 + $0x684] ss:$16 sps:$4 sm:$0xff]   ;;  %v3505_v27 = vld [vmem:[#allocation2 + $0x68c] ss:$16 sps:$4 sm:$0xff]  }
  0xdd   :  { %1580 = vmatprep.subr.bf16.mxu0 %v3410_v28  ;;  %1744 = vmatprep.subr.bf16.mxu1 %v3413_v29  ;;  %v3500_v28 = vld [vmem:[#allocation2 + $0x680] ss:$16 sps:$4 sm:$0xff]   ;;  %v3503_v29 = vld [vmem:[#allocation2 + $0x688] ss:$16 sps:$4 sm:$0xff]  }
  0xe0   :  { %1581 = vmatpush1.bf16.msra.mxu0 %v3408_v30  ;;  %1745 = vmatpush1.bf16.msra.mxu1 %v3411_v31  ;;  %v3508_v30 = vld [vmem:[#allocation2 + $0x6a4] ss:$16 sps:$4 sm:$0xff]   ;;  %v3511_v31 = vld [vmem:[#allocation2 + $0x6ac] ss:$16 sps:$4 sm:$0xff]  }
  0xe1   :  { %1582 = vmatprep.subr.bf16.mxu0 %v3416_v32  ;;  %1746 = vmatprep.subr.bf16.mxu1 %v3419_v33  ;;  %v3506_v32 = vld [vmem:[#allocation2 + $0x6a0] ss:$16 sps:$4 sm:$0xff]   ;;  %v3509_v33 = vld [vmem:[#allocation2 + $0x6a8] ss:$16 sps:$4 sm:$0xff]  }
  0xe4   :  { %1583 = vmatpush1.bf16.msra.mxu0 %v3414_v34  ;;  %1747 = vmatpush1.bf16.msra.mxu1 %v3417_v35  ;;  %v3514_v34 = vld [vmem:[#allocation2 + $0x6c4] ss:$16 sps:$4 sm:$0xff]   ;;  %v3517_v35 = vld [vmem:[#allocation2 + $0x6cc] ss:$16 sps:$4 sm:$0xff]  }
  0xe5   :  { %1584 = vmatprep.subr.bf16.mxu0 %v3422_v36  ;;  %1748 = vmatprep.subr.bf16.mxu1 %v3425_v37  ;;  %v3512_v36 = vld [vmem:[#allocation2 + $0x6c0] ss:$16 sps:$4 sm:$0xff]   ;;  %v3515_v37 = vld [vmem:[#allocation2 + $0x6c8] ss:$16 sps:$4 sm:$0xff]  }
  0xe8   :  { %1585 = vmatpush1.bf16.msra.mxu0 %v3420_v38  ;;  %1749 = vmatpush1.bf16.msra.mxu1 %v3423_v39  ;;  %v3520_v38 = vld [vmem:[#allocation2 + $0x6e4] ss:$16 sps:$4 sm:$0xff]   ;;  %v3523_v39 = vld [vmem:[#allocation2 + $0x6ec] ss:$16 sps:$4 sm:$0xff]  }
  0xe9   :  { %1586 = vmatprep.subr.bf16.mxu0 %v3428_v40  ;;  %1750 = vmatprep.subr.bf16.mxu1 %v3431_v41  ;;  %v3518_v40 = vld [vmem:[#allocation2 + $0x6e0] ss:$16 sps:$4 sm:$0xff]   ;;  %v3521_v41 = vld [vmem:[#allocation2 + $0x6e8] ss:$16 sps:$4 sm:$0xff]  }
  0xec   :  { %1587 = vmatpush1.bf16.msra.mxu0 %v3426_v42  ;;  %1751 = vmatpush1.bf16.msra.mxu1 %v3429_v43  ;;  %v3527_v42 = vld [vmem:[%s4206_s3 + $0x4] ss:$8 sps:$4 sm:$0xff]   ;;  %v3524_v43 = vld [vmem:[%s4203_s0 + $0x18] ss:$0 sps:$4 sm:$0xff]  }
  0xed   :  { %1588 = vmatprep.subr.bf16.mxu0 %v3434_v44  ;;  %1752 = vmatprep.subr.bf16.mxu1 %v3437_v45  ;;  %v3525_v44 = vld [vmem:[%s4206_s3] ss:$8 sps:$4 sm:$0xff]   ;;  %v3530_v45 = vld [vmem:[%s4206_s3 + $0x14] ss:$8 sps:$4 sm:$0xff]  }
  0xf0   :  { %1589 = vmatpush1.bf16.msra.mxu0 %v3432_v46  ;;  %1753 = vmatpush1.bf16.msra.mxu1 %v3435_v47  ;;  %v3528_v46 = vld [vmem:[%s4206_s3 + $0x10] ss:$8 sps:$4 sm:$0xff]   ;;  %v3533_v47 = vld [vmem:[%s4206_s3 + $0x24] ss:$8 sps:$4 sm:$0xff]  }
  0xf1   :  { %1590 = vmatprep.subr.bf16.mxu0 %v3440_v48  ;;  %1754 = vmatprep.subr.bf16.mxu1 %v3443_v49  ;;  %v3531_v48 = vld [vmem:[%s4206_s3 + $0x20] ss:$8 sps:$4 sm:$0xff]   ;;  %v3536_v49 = vld [vmem:[%s4206_s3 + $0x34] ss:$8 sps:$4 sm:$0xff]  }
  0xf4   :  { %1591 = vmatpush1.bf16.msra.mxu0 %v3438_v50  ;;  %1755 = vmatpush1.bf16.msra.mxu1 %v3441_v51  ;;  %v3534_v50 = vld [vmem:[%s4206_s3 + $0x30] ss:$8 sps:$4 sm:$0xff]   ;;  %v3539_v51 = vld [vmem:[%s4206_s3 + $0x44] ss:$8 sps:$4 sm:$0xff]  }
  0xf5   :  { %1592 = vmatprep.subr.bf16.mxu0 %v3446_v52  ;;  %1756 = vmatprep.subr.bf16.mxu1 %v3449_v53  ;;  %v3537_v52 = vld [vmem:[%s4206_s3 + $0x40] ss:$8 sps:$4 sm:$0xff]   ;;  %v3542_v53 = vld [vmem:[%s4206_s3 + $0x54] ss:$8 sps:$4 sm:$0xff]  }
  0xf8   :  { %1593 = vmatpush1.bf16.msra.mxu0 %v3444_v54  ;;  %1757 = vmatpush1.bf16.msra.mxu1 %v3447_v55  ;;  %v3540_v54 = vld [vmem:[%s4206_s3 + $0x50] ss:$8 sps:$4 sm:$0xff]   ;;  %v3545_v55 = vld [vmem:[%s4206_s3 + $0x64] ss:$8 sps:$4 sm:$0xff]  }
  0xf9   :  { %1594 = vmatprep.subr.bf16.mxu0 %v3452_v56  ;;  %1758 = vmatprep.subr.bf16.mxu1 %v3455_v57  ;;  %v3543_v56 = vld [vmem:[%s4206_s3 + $0x60] ss:$8 sps:$4 sm:$0xff]   ;;  %v3548_v57 = vld [vmem:[%s4206_s3 + $0x74] ss:$8 sps:$4 sm:$0xff]  }
  0xfc   :  { %1595 = vmatpush1.bf16.msra.mxu0 %v3450_v58  ;;  %1759 = vmatpush1.bf16.msra.mxu1 %v3453_v59  ;;  %v3546_v58 = vld [vmem:[%s4206_s3 + $0x70] ss:$8 sps:$4 sm:$0xff]   ;;  %v3551_v59 = vld [vmem:[%s4206_s3 + $0x84] ss:$8 sps:$4 sm:$0xff]  }
  0xfd   :  { %1596 = vmatprep.subr.bf16.mxu0 %v3458_v60  ;;  %1760 = vmatprep.subr.bf16.mxu1 %v3461_v61  ;;  %v3549_v60 = vld [vmem:[%s4206_s3 + $0x80] ss:$8 sps:$4 sm:$0xff]   ;;  %v3554_v61 = vld [vmem:[%s4206_s3 + $0x94] ss:$8 sps:$4 sm:$0xff]  }
 0x100   :  { %1597 = vmatpush1.bf16.msra.mxu0 %v3456_v62  ;;  %1761 = vmatpush1.bf16.msra.mxu1 %v3459_v63  ;;  %v3552_v62 = vld [vmem:[%s4206_s3 + $0x90] ss:$8 sps:$4 sm:$0xff]   ;;  %v3557_v63 = vld [vmem:[%s4206_s3 + $0xa4] ss:$8 sps:$4 sm:$0xff]  }
 0x101   :  { %1598 = vmatprep.subr.bf16.mxu0 %v3464_v0  ;;  %1762 = vmatprep.subr.bf16.mxu1 %v3467_v1  ;;  %v3555_v0 = vld [vmem:[%s4206_s3 + $0xa0] ss:$8 sps:$4 sm:$0xff]   ;;  %v3560_v1 = vld [vmem:[%s4206_s3 + $0xb4] ss:$8 sps:$4 sm:$0xff]  }
 0x104   :  { %1599 = vmatpush1.bf16.msra.mxu0 %v3462_v2  ;;  %1763 = vmatpush1.bf16.msra.mxu1 %v3465_v3  ;;  %v3558_v2 = vld [vmem:[%s4206_s3 + $0xb0] ss:$8 sps:$4 sm:$0xff]   ;;  %v3563_v3 = vld [vmem:[%s4206_s3 + $0xc4] ss:$8 sps:$4 sm:$0xff]  }
 0x105   :  { %1600 = vmatprep.subr.bf16.mxu0 %v3470_v4  ;;  %1764 = vmatprep.subr.bf16.mxu1 %v3473_v5  ;;  %v3561_v4 = vld [vmem:[%s4206_s3 + $0xc0] ss:$8 sps:$4 sm:$0xff]   ;;  %v3566_v5 = vld [vmem:[%s4206_s3 + $0xd4] ss:$8 sps:$4 sm:$0xff]  }
 0x108   :  { %1601 = vmatpush1.bf16.msra.mxu0 %v3468_v6  ;;  %1765 = vmatpush1.bf16.msra.mxu1 %v3471_v7  ;;  %v3564_v6 = vld [vmem:[%s4206_s3 + $0xd0] ss:$8 sps:$4 sm:$0xff]   ;;  %v3569_v7 = vld [vmem:[%s4206_s3 + $0xe4] ss:$8 sps:$4 sm:$0xff]  }
 0x109   :  { %1611 = vmatprep.subr.bf16.mxu0 %v3478_v8  ;;  %1775 = vmatprep.subr.bf16.mxu1 %v3481_v9  ;;  %v3567_v8 = vld [vmem:[%s4206_s3 + $0xe0] ss:$8 sps:$4 sm:$0xff]   ;;  %v3572_v9 = vld [vmem:[%s4206_s3 + $0xf4] ss:$8 sps:$4 sm:$0xff]  }
 0x10b   :  { %1603 = vmatmul.mubr.bf16.vlgmr.msra.gmra.mrb[0].mxu0 %v2730_v13  ;;  %1767 = vmatmul.mubr.bf16.vlgmr.msra.gmra.mrb[0].mxu1 %v2730_v13  ;;  %v3621_v13 = vld [vmem:[#allocation7 + $0x40] sm:$0xff]  }
 0x10c   :  { %1612 = vmatpush1.bf16.msra.mxu0 %v3476_v10  ;;  %1776 = vmatpush1.bf16.msra.mxu1 %v3479_v12  ;;  %v3570_v10 = vld [vmem:[%s4206_s3 + $0xf0] ss:$8 sps:$4 sm:$0xff]   ;;  %v3575_v12 = vld [vmem:[%s4206_s3 + $0x104] ss:$8 sps:$4 sm:$0xff]  }
 0x10d   :  { %1613 = vmatprep.subr.bf16.mxu0 %v3484_v14  ;;  %1777 = vmatprep.subr.bf16.mxu1 %v3487_v15  ;;  %v3622_v14 = vld [vmem:[#allocation7] sm:$0xff]   ;;  %v3623_v15 = vld [vmem:[#allocation7 + $0x48] sm:$0xff]  }
 0x10e   :  { %1643 = vmatprep.mubr.bf16.mxu0 %v3779_v22  ;;  %1807 = vmatprep.mubr.bf16.mxu1 %v3779_v22  ;;  %v3630_v22 = vld [vmem:[#allocation7 + $0x20] sm:$0xff]  }
 0x110   :  { %1614 = vmatpush1.bf16.msra.mxu0 %v3482_v16  ;;  %1778 = vmatpush1.bf16.msra.mxu1 %v3485_v17  ;;  %v3624_v16 = vld [vmem:[#allocation7 + $0x8] sm:$0xff]   ;;  %v3625_v17 = vld [vmem:[#allocation7 + $0x50] sm:$0xff]  }
 0x111   :  { %1615 = vmatprep.subr.bf16.mxu0 %v3490_v18  ;;  %1779 = vmatprep.subr.bf16.mxu1 %v3493_v19  ;;  %v3626_v18 = vld [vmem:[#allocation7 + $0x10] sm:$0xff]   ;;  %v3627_v19 = vld [vmem:[#allocation7 + $0x58] sm:$0xff]  }
 0x114   :  { %1616 = vmatpush1.bf16.msra.mxu0 %v3488_v20  ;;  %1780 = vmatpush1.bf16.msra.mxu1 %v3491_v21  ;;  %v3628_v20 = vld [vmem:[#allocation7 + $0x18] sm:$0xff]   ;;  %v3629_v21 = vld [vmem:[#allocation7 + $0x60] sm:$0xff]  }
 0x115   :  { %1617 = vmatprep.subr.bf16.mxu0 %v3496_v11  ;;  %1781 = vmatprep.subr.bf16.mxu1 %v3499_v23  ;;  %v3631_v11 = vld [vmem:[#allocation7 + $0x68] sm:$0xff]  }
 0x116   :  { %v3632_v23 = vld [vmem:[#allocation7 + $0x28] sm:$0xff]  }
 0x118   :  { %1618 = vmatpush1.bf16.msra.mxu0 %v3494_v24  ;;  %1782 = vmatpush1.bf16.msra.mxu1 %v3497_v25  ;;  %v323_v24 = vlaneseq }
 0x119   :  { %1619 = vmatprep.subr.bf16.mxu0 %v3502_v26  ;;  %1783 = vmatprep.subr.bf16.mxu1 %v3505_v27  ;;  %v4024_v27 = vld [vmem:[#allocation5] sm:$0xf] }
 0x11a   :  { %v4021_v25 = vshrl.u32 %v323_v24, 7  ;;  %v3635_v24 = vld [vmem:[#allocation7 + $0x78] sm:$0xff]  }
 0x11c   :  { %1620 = vmatpush1.bf16.msra.mxu0 %v3500_v28  ;;  %1784 = vmatpush1.bf16.msra.mxu1 %v3503_v29  ;;  %v325_v26 = vsub.s32 0, %v4021_v25  ;;  %v329_v28 = vsub.s32 1, %v4021_v25  ;;  %v337_v29 = vsub.s32 3, %v4021_v25 }
 0x11d   :  { %1621 = vmatprep.subr.bf16.mxu0 %v3508_v30  ;;  %1785 = vmatprep.subr.bf16.mxu1 %v3511_v31 }
 0x11e   :  { %v326_v30 = vrot.slane %v4024_v27, %v325_v26  ;;  %v330_v31 = vrot.slane %v4024_v27, %v329_v28 }
 0x120   :  { %1622 = vmatpush1.bf16.msra.mxu0 %v3506_v32  ;;  %1786 = vmatpush1.bf16.msra.mxu1 %v3509_v33  ;;  %v338_v32 = vrot.slane %v4024_v27, %v337_v29  ;;  %v3780_v29 = vmov 0.0  }
 0x121   :  { %1623 = vmatprep.subr.bf16.mxu0 %v3514_v34  ;;  %1787 = vmatprep.subr.bf16.mxu1 %v3517_v35 }
 0x124   :  { %1624 = vmatpush1.bf16.msra.mxu0 %v3512_v36  ;;  %1788 = vmatpush1.bf16.msra.mxu1 %v3515_v37 }
 0x125   :  { %1625 = vmatprep.subr.bf16.mxu0 %v3520_v38  ;;  %1789 = vmatprep.subr.bf16.mxu1 %v3523_v39 }
 0x128   :  { %1626 = vmatpush1.bf16.msra.mxu0 %v3518_v40  ;;  %1790 = vmatpush1.bf16.msra.mxu1 %v3521_v41 }
 0x129   :  { %2220 = vmatprep.subr.bf16.mxu0 %v3527_v42  ;;  %3056 = vmatprep.subr.bf16.mxu1 %v3621_v13  ;;  %v3614_v13 = vld [vmem:[%s4206_s3 + $0x1d4] ss:$8 sps:$4 sm:$0xff]  }
 0x12b   :  { %1644 = vmatmul.mubr.bf16.vlgmr.msra.gmra.mrb[0].mxu0 %v3524_v43  ;;  %1808 = vmatmul.mubr.bf16.vlgmr.msra.gmra.mrb[0].mxu1 %v3524_v43 }
 0x12c   :  { %2221 = vmatpush1.bf16.msra.mxu0 %v3525_v44  ;;  %3057 = vmatpush3.bf16.msra.mxu1 %v3622_v14  ;;  %v3612_v14 = vld [vmem:[%s4206_s3 + $0x1d0] ss:$8 sps:$4 sm:$0xff]  }
 0x12d   :  { %2222 = vmatprep.subr.bf16.mxu0 %v3530_v45  ;;  %3058 = vmatprep.subr.bf16.mxu1 %v3623_v15 }
 0x130   :  { %2223 = vmatpush1.bf16.msra.mxu0 %v3528_v46  ;;  %3059 = vmatpush3.bf16.msra.mxu1 %v3624_v16  ;;  %v3617_v16 = vld [vmem:[%s4206_s3 + $0x1e4] ss:$8 sps:$4 sm:$0xff]  }
 0x131   :  { %2224 = vmatprep.subr.bf16.mxu0 %v3533_v47  ;;  %3060 = vmatprep.subr.bf16.mxu1 %v3625_v17  ;;  %v3615_v17 = vld [vmem:[%s4206_s3 + $0x1e0] ss:$8 sps:$4 sm:$0xff]  }
 0x134   :  { %2225 = vmatpush1.bf16.msra.mxu0 %v3531_v48  ;;  %3061 = vmatpush3.bf16.msra.mxu1 %v3626_v18  ;;  %v3573_v48 = vld [vmem:[%s4206_s3 + $0x100] ss:$8 sps:$4 sm:$0xff]  }
 0x135   :  { %2226 = vmatprep.subr.bf16.mxu0 %v3536_v49  ;;  %3062 = vmatprep.subr.bf16.mxu1 %v3627_v19  ;;  %v3620_v19 = vld [vmem:[%s4206_s3 + $0x1f4] ss:$8 sps:$4 sm:$0xff]  }
 0x138   :  { %2227 = vmatpush1.bf16.msra.mxu0 %v3534_v50  ;;  %3063 = vmatpush3.bf16.msra.mxu1 %v3628_v20  ;;  %v3578_v50 = vld [vmem:[%s4206_s3 + $0x114] ss:$8 sps:$4 sm:$0xff]   ;;  %v3618_v20 = vld [vmem:[%s4206_s3 + $0x1f0] ss:$8 sps:$4 sm:$0xff]  }
 0x139   :  { %2228 = vmatprep.subr.bf16.mxu0 %v3539_v51  ;;  %3064 = vmatprep.subr.bf16.mxu1 %v3629_v21 }
 0x13c   :  { %2229 = vmatpush1.bf16.msra.mxu0 %v3537_v52  ;;  %3065 = vmatpush3.bf16.msra.mxu1 %v3630_v22  ;;  %v3576_v52 = vld [vmem:[%s4206_s3 + $0x110] ss:$8 sps:$4 sm:$0xff]  }
 0x13d   :  { %2230 = vmatprep.subr.bf16.mxu0 %v3542_v53  ;;  %3066 = vmatprep.subr.bf16.mxu1 %v3631_v11  ;;  %v3581_v53 = vld [vmem:[%s4206_s3 + $0x124] ss:$8 sps:$4 sm:$0xff]   ;;  %v3633_v11 = vld [vmem:[#allocation7 + $0x70] sm:$0xff]  }
 0x140   :  { %2231 = vmatpush1.bf16.msra.mxu0 %v3540_v54  ;;  %3067 = vmatpush3.bf16.msra.mxu1 %v3632_v23  ;;  %v3579_v54 = vld [vmem:[%s4206_s3 + $0x120] ss:$8 sps:$4 sm:$0xff]   ;;  %v3634_v23 = vld [vmem:[#allocation7 + $0x30] sm:$0xff]  }
 0x141   :  { %2232 = vmatprep.subr.bf16.mxu0 %v3545_v55  ;;  %v3584_v55 = vld [vmem:[%s4206_s3 + $0x134] ss:$8 sps:$4 sm:$0xff]   ;;  %3068 = vmatprep.subr.bf16.mxu1 %v3633_v11 }
 0x144   :  { %2233 = vmatpush1.bf16.msra.mxu0 %v3543_v56  ;;  %v3582_v56 = vld [vmem:[%s4206_s3 + $0x130] ss:$8 sps:$4 sm:$0xff]   ;;  %3069 = vmatpush3.bf16.msra.mxu1 %v3634_v23 }
 0x145   :  { %2234 = vmatprep.subr.bf16.mxu0 %v3548_v57  ;;  %v3587_v57 = vld [vmem:[%s4206_s3 + $0x144] ss:$8 sps:$4 sm:$0xff]   ;;  %3070 = vmatprep.subr.bf16.mxu1 %v3635_v24 }
 0x148   :  { %2235 = vmatpush1.bf16.msra.mxu0 %v3546_v58  ;;  %v3585_v58 = vld [vmem:[%s4206_s3 + $0x140] ss:$8 sps:$4 sm:$0xff]  }
 0x149   :  { %2236 = vmatprep.subr.bf16.mxu0 %v3551_v59  ;;  %v3590_v59 = vld [vmem:[%s4206_s3 + $0x154] ss:$8 sps:$4 sm:$0xff]  }
 0x14c   :  { %2237 = vmatpush1.bf16.msra.mxu0 %v3549_v60  ;;  %v3588_v60 = vld [vmem:[%s4206_s3 + $0x150] ss:$8 sps:$4 sm:$0xff]  }
 0x14d   :  { %2238 = vmatprep.subr.bf16.mxu0 %v3554_v61  ;;  %v3593_v61 = vld [vmem:[%s4206_s3 + $0x164] ss:$8 sps:$4 sm:$0xff]  }
 0x150   :  { %2239 = vmatpush1.bf16.msra.mxu0 %v3552_v62  ;;  %v3591_v62 = vld [vmem:[%s4206_s3 + $0x160] ss:$8 sps:$4 sm:$0xff]  }
 0x151   :  { %2240 = vmatprep.subr.bf16.mxu0 %v3557_v63  ;;  %v3596_v63 = vld [vmem:[%s4206_s3 + $0x174] ss:$8 sps:$4 sm:$0xff]  }
 0x154   :  { %2241 = vmatpush1.bf16.msra.mxu0 %v3555_v0  ;;  %v3594_v0 = vld [vmem:[%s4206_s3 + $0x170] ss:$8 sps:$4 sm:$0xff]  }
 0x155   :  { %2242 = vmatprep.subr.bf16.mxu0 %v3560_v1  ;;  %v3599_v1 = vld [vmem:[%s4206_s3 + $0x184] ss:$8 sps:$4 sm:$0xff]  }
 0x158   :  { %2243 = vmatpush1.bf16.msra.mxu0 %v3558_v2  ;;  %v3597_v2 = vld [vmem:[%s4206_s3 + $0x180] ss:$8 sps:$4 sm:$0xff]  }
 0x159   :  { %2244 = vmatprep.subr.bf16.mxu0 %v3563_v3  ;;  %v3602_v3 = vld [vmem:[%s4206_s3 + $0x194] ss:$8 sps:$4 sm:$0xff]  }
 0x15c   :  { %2245 = vmatpush1.bf16.msra.mxu0 %v3561_v4  ;;  %v3600_v4 = vld [vmem:[%s4206_s3 + $0x190] ss:$8 sps:$4 sm:$0xff]  }
 0x15d   :  { %2246 = vmatprep.subr.bf16.mxu0 %v3566_v5  ;;  %v3605_v5 = vld [vmem:[%s4206_s3 + $0x1a4] ss:$8 sps:$4 sm:$0xff]  }
 0x160   :  { %2247 = vmatpush1.bf16.msra.mxu0 %v3564_v6  ;;  %v3603_v6 = vld [vmem:[%s4206_s3 + $0x1a0] ss:$8 sps:$4 sm:$0xff]  }
 0x161   :  { %2248 = vmatprep.subr.bf16.mxu0 %v3569_v7  ;;  %v3608_v7 = vld [vmem:[%s4206_s3 + $0x1b4] ss:$8 sps:$4 sm:$0xff]  }
 0x164   :  { %2249 = vmatpush1.bf16.msra.mxu0 %v3567_v8  ;;  %v3606_v8 = vld [vmem:[%s4206_s3 + $0x1b0] ss:$8 sps:$4 sm:$0xff]  }
 0x165   :  { %2250 = vmatprep.subr.bf16.mxu0 %v3572_v9  ;;  %v3611_v9 = vld [vmem:[%s4206_s3 + $0x1c4] ss:$8 sps:$4 sm:$0xff]  }
 0x168   :  { %2251 = vmatpush1.bf16.msra.mxu0 %v3570_v10  ;;  %v3609_v10 = vld [vmem:[%s4206_s3 + $0x1c0] ss:$8 sps:$4 sm:$0xff]  }
 0x169   :  { %2261 = vmatprep.subr.bf16.mxu0 %v3575_v12  ;;  %v333_v12 = vsub.s32 2, %v4021_v25  ;;  %v3638_v25 = vld [vmem:[%s4210_s7 + $0x8] sm:$0xff]  }
 0x16b   :  { %v334_v15 = vrot.slane %v4024_v27, %v333_v12  ;;  %v3636_v27 = vld [vmem:[#allocation7 + $0x38] sm:$0xff]  }
 0x16c   :  { %3071 = vmatpush3.bf16.msra.mxu1 %v3636_v27 }
 0x16d   :  { %3096 = vmatprep.subr.bf16.mxu1 %v3780_v29 }
 0x1fe   :  { %v1645_v33 = vpop.f32.mrb[0].mxu0  ;;  %v4035_v34 = vpop.f32.mrb[0].mxu1 }
 0x1ff   :  { %v3136_v35 = vadd.f32 %v1645_v33, %v326_v30  ;;  %v1647_v36 = vpop.f32.mrb[1].mxu0  ;;  %v1811_v37 = vpop.f32.mrb[1].mxu1  ;;  %v3138_v18 = vadd.f32 %v4035_v34, %v334_v15  ;;  %v1888_v30 = vld [vmem:[%s4207_s4] sm:$0x3] }
 0x200   :  { %v3137_v38 = vadd.f32 %v1647_v36, %v330_v31  ;;  %v3139_v39 = vadd.f32 %v1811_v37, %v338_v32  ;;  %v1649_v40 = vpop.f32.mrb[2].mxu0  ;;  %v1813_v41 = vpop.f32.mrb[2].mxu1  ;;  %v1893_v31 = vrot.slane %v1888_v30, %v325_v26  ;;  %v1897_v32 = vrot.slane %v1888_v30, %v329_v28  ;;  %v3639_v26 = vld [vmem:[%s4210_s7 + $0x10] sm:$0xff]   ;;  %v3640_v28 = vld [vmem:[%s4210_s7 + $0x18] sm:$0xff]  }
 0x201   :  { %v1816_v42 = vmax.f32 %v3136_v35, 0.0  ;;  %v1650_v43 = vpop.f32.mrb[3].mxu0  ;;  %v1814_v44 = vpop.f32.mrb[3].mxu1  ;;  %v1818_v21 = vmax.f32 %v3138_v18, 0.0 }
 0x202   :  { %v1817_v45 = vmax.f32 %v3137_v38, 0.0  ;;  %v1819_v46 = vmax.f32 %v3139_v39, 0.0  ;;  %v3641_v44 = vld [vmem:[%s4210_s7 + $0x20] sm:$0xff]  }
 0x203   :  { %v1820_v49 = vpack.c.bf16 %v1816_v42, %v1816_v42  ;;  %v1822_v22 = vpack.c.bf16 %v1818_v21, %v1818_v21  ;;  %v3637_v42 = vld [vmem:[%s4210_s7] sm:$0xff]  }
 0x204   :  { %v1821_v47 = vpack.c.bf16 %v1817_v45, %v1817_v45  ;;  %v1823_v51 = vpack.c.bf16 %v1819_v46, %v1819_v46  ;;  %v3642_v45 = vld [vmem:[%s4210_s7 + $0x28] sm:$0xff]   ;;  %v3643_v46 = vld [vmem:[%s4210_s7 + $0x30] sm:$0xff]  }
 0x206   :  { %2252 = vmatprep.mubr.bf16.mxu0 %v1821_v47  ;;  %v3644_v47 = vld [vmem:[%s4210_s7 + $0x38] sm:$0xff]  }
 0x207   :  { %2253 = vmatmul.mubr.bf16.vlgmr.msra.gmra.mrb[4].mxu0 %v1820_v49  ;;  %v3021_v49 = vld [vmem:[%s4209_s6] ss:$0 sm:$0xff] }
 0x208   :  { %2262 = vmatpush1.bf16.msra.mxu0 %v3573_v48  ;;  %2293 = vmatprep.mubr.bf16.mxu0 %v1823_v51 }
 0x209   :  { %2263 = vmatprep.subr.bf16.mxu0 %v3578_v50 }
 0x20c   :  { %2264 = vmatpush1.bf16.msra.mxu0 %v3576_v52 }
 0x20d   :  { %2265 = vmatprep.subr.bf16.mxu0 %v3581_v53 }
 0x210   :  { %2266 = vmatpush1.bf16.msra.mxu0 %v3579_v54 }
 0x211   :  { %2267 = vmatprep.subr.bf16.mxu0 %v3584_v55 }
 0x214   :  { %2268 = vmatpush1.bf16.msra.mxu0 %v3582_v56  ;;  %v3645_v56 = vld [vmem:[#allocation8] sm:$0xff]  }
 0x215   :  { %2269 = vmatprep.subr.bf16.mxu0 %v3587_v57 }
 0x218   :  { %2270 = vmatpush1.bf16.msra.mxu0 %v3585_v58  ;;  %v3646_v58 = vld [vmem:[#allocation8 + $0x8] sm:$0xff]  }
 0x219   :  { %2271 = vmatprep.subr.bf16.mxu0 %v3590_v59  ;;  %v3647_v59 = vld [vmem:[#allocation8 + $0x10] sm:$0xff]  }
 0x21c   :  { %2272 = vmatpush1.bf16.msra.mxu0 %v3588_v60  ;;  %v3648_v60 = vld [vmem:[#allocation8 + $0x18] sm:$0xff]  }
 0x21d   :  { %2273 = vmatprep.subr.bf16.mxu0 %v3593_v61  ;;  %v3649_v61 = vld [vmem:[#allocation8 + $0x20] sm:$0xff]  }
 0x220   :  { %2274 = vmatpush1.bf16.msra.mxu0 %v3591_v62  ;;  %v3650_v62 = vld [vmem:[#allocation8 + $0x28] sm:$0xff]  }
 0x221   :  { %2275 = vmatprep.subr.bf16.mxu0 %v3596_v63  ;;  %v3651_v63 = vld [vmem:[#allocation8 + $0x30] sm:$0xff]  }
 0x224   :  { %2276 = vmatpush1.bf16.msra.mxu0 %v3594_v0  ;;  %v3652_v0 = vld [vmem:[#allocation8 + $0x38] sm:$0xff]  }
 0x225   :  { %2277 = vmatprep.subr.bf16.mxu0 %v3599_v1  ;;  %v3038_v1 = vld [vmem:[%s4211_s8] ss:$0 sm:$0xff]  ;;  %s3741_s8 = scalar_lea.vmem %s2716_s21, 64 }
 0x226   :  { %p3742_p4 = scmp.ne.s32.totalorder %s2716_s21, %s3741_s8  ;;  %p3747_p6 = scmp.lt.s32.totalorder %s3741_s8, %s3741_s8 }
 0x228   :  { %2278 = vmatpush1.bf16.msra.mxu0 %v3597_v2  ;;  %p3748_p7 = por %p3747_p6, %p3746_p5 }
 0x229   :  { %2279 = vmatprep.subr.bf16.mxu0 %v3602_v3 }
 0x22a   :  { %p3749_p8 = pnand %p3748_p7, %p3742_p4 }
 0x22c   :  { %2280 = vmatpush1.bf16.msra.mxu0 %v3600_v4 }
 0x22d   :  { %2281 = vmatprep.subr.bf16.mxu0 %v3605_v5 }
 0x230   :  { %2282 = vmatpush1.bf16.msra.mxu0 %v3603_v6 }
 0x231   :  { %2283 = vmatprep.subr.bf16.mxu0 %v3608_v7 }
 0x234   :  { %2284 = vmatpush1.bf16.msra.mxu0 %v3606_v8 }
 0x235   :  { %2285 = vmatprep.subr.bf16.mxu0 %v3611_v9  ;;  %v3047_v9 = vld [vmem:[%s4213_s10] ss:$0 sm:$0xff] }
 0x238   :  { %2286 = vmatpush1.bf16.msra.mxu0 %v3609_v10 }
 0x239   :  { %2287 = vmatprep.subr.bf16.mxu0 %v3614_v13 }
 0x23c   :  { %2288 = vmatpush1.bf16.msra.mxu0 %v3612_v14 }
 0x23d   :  { %2289 = vmatprep.subr.bf16.mxu0 %v3617_v16 }
 0x240   :  { %2290 = vmatpush1.bf16.msra.mxu0 %v3615_v17 }
 0x241   :  { %2291 = vmatprep.subr.bf16.mxu0 %v3620_v19 }
 0x244   :  { %2292 = vmatpush1.bf16.msra.mxu0 %v3618_v20 }
 0x247   :  { %2294 = vmatmul.mubr.bf16.vlgmr.msra.gmra.mrb[4].mxu0 %v1822_v22 }
 0x31a   :  { %v2295_v33 = vpop.f32.mrb[4].mxu0 }
 0x31b   :  { %v3140_v34 = vadd.f32 %v2295_v33, %v1893_v31  ;;  %v2297_v35 = vpop.f32.mrb[5].mxu0 }
 0x31c   :  { %v3141_v36 = vadd.f32 %v2297_v35, %v1897_v32  ;;  %v2299_v37 = vpop.f32.mrb[6].mxu0 }
 0x31d   :  { %v2302_v38 = vmax.f32 %v3140_v34, 0.0  ;;  %v2300_v39 = vpop.f32.mrb[7].mxu0 }
 0x31e   :  { %v2303_v40 = vmax.f32 %v3141_v36, 0.0 }
 0x31f   :  { %v2304_v43 = vpack.c.bf16 %v2302_v38, %v2302_v38 }
 0x320   :  { %v2305_v41 = vpack.c.bf16 %v2303_v40, %v2303_v40 }
 0x322   :  { %2473 = vmatprep.mubr.bf16.mxu1 %v2305_v41 }
 0x323   :  { %2474 = vmatmul.mubr.bf16.vlgmr.msra.gmra.mrb[4].mxu1 %v2304_v43 }
 0x324   :  { %3097 = vmatpush3.bf16.msra.mxu1 %v3637_v42  ;;  %3112 = vmatprep.mubr.msk.bf16.mxu1 %vm3781_vm0, %v3780_v29 }
 0x325   :  { %3098 = vmatprep.subr.bf16.mxu1 %v3780_v29 }
 0x328   :  { %3099 = vmatpush3.bf16.msra.mxu1 %v3638_v25 }
 0x329   :  { %3100 = vmatprep.subr.bf16.mxu1 %v3780_v29 }
 0x32c   :  { %3101 = vmatpush3.bf16.msra.mxu1 %v3639_v26 }
 0x32d   :  { %3102 = vmatprep.subr.bf16.mxu1 %v3780_v29 }
 0x330   :  { %3103 = vmatpush3.bf16.msra.mxu1 %v3640_v28 }
 0x331   :  { %3104 = vmatprep.subr.bf16.mxu1 %v3780_v29 }
 0x334   :  { %3105 = vmatpush3.bf16.msra.mxu1 %v3641_v44 }
 0x335   :  { %3106 = vmatprep.subr.bf16.mxu1 %v3780_v29 }
 0x338   :  { %3107 = vmatpush3.bf16.msra.mxu1 %v3642_v45 }
 0x339   :  { %3108 = vmatprep.subr.bf16.mxu1 %v3780_v29 }
 0x33c   :  { %3109 = vmatpush3.bf16.msra.mxu1 %v3643_v46 }
 0x33d   :  { %3110 = vmatprep.subr.bf16.mxu1 %v3780_v29 }
 0x340   :  { %3111 = vmatpush3.bf16.msra.mxu1 %v3644_v47 }
 0x341   :  { %3116 = vmatprep.subr.bf16.mxu1 %v3780_v29 }
 0x3f6   :  { %v3072_v48 = vpop.f32.mrb[4].mxu1 }
 0x3f7   :  { %v3073_v50 = vpop.f32.mrb[5].mxu1 }
 0x3f8   :  { %v3074_v51 = vadd.f32 %v3073_v50, %v3072_v48  ;;  %v3075_v52 = vpop.f32.mrb[6].mxu1 }
 0x3f9   :  { %v3076_v53 = vpop.f32.mrb[7].mxu1 }
 0x3fa   :  { %v2476_v54 = vadd.f32 %v3074_v51, %v3021_v49 }
 0x3fc   :  { %v2481_v55 = vmax.f32 %v2476_v54, 0.0 }
 0x3fe   :  { %v2482_v57 = vpack.c.bf16 %v2481_v55, %v2481_v55 }
 0x400   :  { %3113 = vmatmul.mubr.bf16.vlgmr.msra.gmra.mrb[8].mxu1 %v2482_v57 }
 0x401   :  { %3117 = vmatpush3.bf16.msra.mxu1 %v3645_v56  ;;  %3132 = vmatprep.mubr.msk.bf16.mxu1 %vm3781_vm0, %v3780_v29 }
 0x402   :  { %3118 = vmatprep.subr.bf16.mxu1 %v3780_v29 }
 0x405   :  { %3119 = vmatpush3.bf16.msra.mxu1 %v3646_v58 }
 0x406   :  { %3120 = vmatprep.subr.bf16.mxu1 %v3780_v29 }
 0x409   :  { %3121 = vmatpush3.bf16.msra.mxu1 %v3647_v59 }
 0x40a   :  { %3122 = vmatprep.subr.bf16.mxu1 %v3780_v29 }
 0x40d   :  { %3123 = vmatpush3.bf16.msra.mxu1 %v3648_v60 }
 0x40e   :  { %3124 = vmatprep.subr.bf16.mxu1 %v3780_v29 }
 0x411   :  { %3125 = vmatpush3.bf16.msra.mxu1 %v3649_v61 }
 0x412   :  { %3126 = vmatprep.subr.bf16.mxu1 %v3780_v29 }
 0x415   :  { %3127 = vmatpush3.bf16.msra.mxu1 %v3650_v62 }
 0x416   :  { %3128 = vmatprep.subr.bf16.mxu1 %v3780_v29 }
 0x419   :  { %3129 = vmatpush3.bf16.msra.mxu1 %v3651_v63 }
 0x41a   :  { %3130 = vmatprep.subr.bf16.mxu1 %v3780_v29 }
 0x41d   :  { %3131 = vmatpush3.bf16.msra.mxu1 %v3652_v0 }
 0x4d3   :  { %v2588_v2 = vpop.f32.mrb[8].mxu1 }
 0x4d4   :  { %v2589_v3 = vadd.f32 %v3038_v1, %v2588_v2  ;;  %v3114_v4 = vpop.f32.mrb[9].mxu1 }
 0x4d5   :  { %v2591_v5 = vpop.f32.mrb[10].mxu1 }
 0x4d6   :  { %v2594_v6 = vmax.f32 %v2589_v3, 0.0  ;;  %v3115_v7 = vpop.f32.mrb[11].mxu1 }
 0x4d8   :  { %v2595_v8 = vpack.c.bf16 %v2594_v6, %v2594_v6 }
 0x4da   :  { %3133 = vmatmul.mubr.bf16.vlgmr.msra.gmra.mrb[12].mxu1 %v2595_v8 }
 0x5ad   :  { %v2701_v10 = vpop.f32.mrb[12].mxu1 }
 0x5ae   :  { %v2702_v12 = vadd.f32 %v3047_v9, %v2701_v10  ;;  %v3134_v13 = vpop.f32.mrb[13].mxu1 }
 0x5af   :  { %v2704_v14 = vpop.f32.mrb[14].mxu1 }
 0x5b0   :  { %v2707_v15 = vpack.c.bf16 %v2702_v12, %v2702_v12  ;;  %v3135_v16 = vpop.f32.mrb[15].mxu1 }
 0x5b2   :  { %2708 = vst [vmem:[#allocation10] sm:$0xf] %v2707_v15 }
 0x5b3   :  { %3752 = shalt.err (!%p3749_p8)
}
 0x5b4   :  { %s3753_s10 = scalar_lea.hbm %s4214_s11, 64 }
 0x5b5   :  { %p3754_p9 = scmp.ne.s32.totalorder %s4214_s11, %s3753_s10  ;;  %p3757_p10 = scmp.lt.u32.totalorder %s3753_s10, %s4214_s11 }
 0x5b7   :  { %p3759_p11 = pnand %p3757_p10, %p3754_p9 }
 0x5b9   :  { %3762 = shalt.err (!%p3759_p11)
}
 0x5ba   :  { %2718 = dma.vmem_to_hbm [thread:$0]  %s2716_s21, 64, %s4214_s11, [#allocation4]  }
 0x5bb   :  { %3769 = dma.done.wait [#allocation4], 64  }
 0x5bc   :  { %3770 = vsyncadd [#allocation4], 4294967232 }
 0x5bd   :  { %2722 = vsyncpa [#allocation3], 1 }
 0x5be   :  { %2723 = vsyncpa [#allocation6], 1 }
 0x5bf   :  { %2724 = vsyncpa [#allocation9], 1 }
 0x5c0   :  { %2725 = vsyncpa [#allocation4], 1 }

</bundles_post_ra>
